<compile_context>
chip_gen: v5e
topology: v5e:2x2
jax: 0.10.0
libtpu: 0.0.40
codegen_flags: <defaults>
</compile_context>

<pallas_src>
import functools

import jax
import jax.numpy as jnp
from jax.experimental import pallas as pl
from jax.experimental.pallas import tpu as pltpu


def _round_up(x, m):
    return ((x + m - 1) // m) * m


def _vit_proj_kernel(x_ref, w1_ref, b1_ref, w2_ref, b2_ref, o_ref,
                     *, eps, rows_per_chunk):
    # x_ref:  (tm, H)    f32 tile of patch embeddings (cast to bf16 per chunk)
    # w1_ref: (H, MID)   bf16 (resident, constant index map)
    # b1_ref: (1, MID)   f32
    # w2_ref: (MID, D)   bf16 (resident; LayerNorm gamma pre-folded in)
    # b2_ref: (1, D)     f32  (beta @ W2 + b2 pre-folded)
    # o_ref:  (tm, D)    f32
    tm = x_ref.shape[0]
    n_chunks = tm // rows_per_chunk  # tm is a multiple of rows_per_chunk

    # Small static unrolled loop over row chunks: the MXU matmuls of one chunk
    # can co-issue with the LN (VPU/XLU/EUP) work of the neighbouring chunk.
    for c in range(n_chunks):
        r0 = c * rows_per_chunk

        # projection1 on the MXU: bf16 x bf16 -> f32 accumulate.
        xb = x_ref[pl.ds(r0, rows_per_chunk), :].astype(jnp.bfloat16)
        h = jnp.dot(xb, w1_ref[...],
                    preferred_element_type=jnp.float32) + b1_ref[...]

        # LayerNorm statistics over the last dim (512) in f32 (nn.LayerNorm
        # semantics: biased variance, eps inside the rsqrt).  gamma/beta are
        # folded into W2/b2, so only the normalization remains here.
        mu = jnp.mean(h, axis=-1, keepdims=True)
        hc = h - mu
        var = jnp.mean(hc * hc, axis=-1, keepdims=True)
        y = (hc * jax.lax.rsqrt(var + eps)).astype(jnp.bfloat16)

        # projection2 (with gamma folded in) on the MXU, f32 accumulate.
        out = jnp.dot(y, w2_ref[...],
                      preferred_element_type=jnp.float32) + b2_ref[...]
        o_ref[pl.ds(r0, rows_per_chunk), :] = out.astype(o_ref.dtype)


def _pick_tm(M):
    """Row-tile size.

    Small M: one grid step, rows rounded to 16 (bf16 sublane packing).
    Large M: multiple of 256 (MXU-friendly), capped at 1024 rows (fits the
    v5e 16 MiB default scoped-VMEM budget at DINOv2 scale), and chosen so the
    grid has >= 2 steps -- dimension_semantics=("parallel",) then shards rows
    across the two TensorCores on v7x.
    """
    if M <= 256:
        return _round_up(M, 16)
    return min(1024, _round_up(pl.cdiv(M, 2), 256))


def vit_embedder_head(patches, w1, b1, gamma, beta, w2, b2,
                      *, eps=1e-5, tm=None):
    """Fused projection1 -> LayerNorm(512) -> projection2.

    patches: (B, Nv, H) float32 patch embeddings from the ViT backbone.
    returns: (B, Nv, D) float32
    """
    B, Nv, H = patches.shape
    MID = w1.shape[1]
    D = w2.shape[1]
    M = B * Nv

    if tm is None:
        tm = _pick_tm(M)
    rows_per_chunk = min(tm, 256)
    assert tm % rows_per_chunk == 0

    # Activations stay f32 in HBM; the bf16 cast happens per-tile in-kernel.
    x = patches.reshape(M, H)

    # Weight prep (done once, reused across all grid steps):
    #   - W1 cast to bf16.
    #   - LayerNorm affine folded into projection2 *in f32*, then cast to
    #     bf16:  (hc*inv*gamma + beta) @ W2 + b2
    #          = (hc*inv) @ (gamma[:,None]*W2) + (beta@W2 + b2).
    w1_b = w1.astype(jnp.bfloat16)
    w2_f32 = w2.astype(jnp.float32)
    g_f32 = gamma.astype(jnp.float32)
    w2_b = (g_f32[:, None] * w2_f32).astype(jnp.bfloat16)
    b2_f = (beta.astype(jnp.float32) @ w2_f32
            + b2.astype(jnp.float32)).reshape(1, D)
    b1_r = b1.reshape(1, MID).astype(jnp.float32)

    kernel = functools.partial(_vit_proj_kernel, eps=eps,
                               rows_per_chunk=rows_per_chunk)

    # Ragged grid: last block may be partial; OOB input rows are garbage but
    # per-row LN keeps rows independent and OOB output rows are masked on the
    # HBM writeback, so no wrapper pad / slice is needed.
    #
    # VMEM at DINOv2 scale (H=768, tm=1024): x 2x3 MiB + out 2x2 MiB +
    # weights ~1.3 MiB x2 ≈ 12.5 MiB -> fits the v5e 16 MiB default scoped
    # budget; raise vmem_limit_bytes (or Buffered(1) on the weight specs) only
    # if embedding_dim grows.
    out = pl.pallas_call(
        kernel,
        out_shape=jax.ShapeDtypeStruct((M, D), jnp.float32),
        grid_spec=pltpu.PrefetchScalarGridSpec(
            num_scalar_prefetch=0,
            grid=(pl.cdiv(M, tm),),
            in_specs=[
                pl.BlockSpec((tm, H), lambda i: (i, 0)),       # x tile (f32)
                pl.BlockSpec((H, MID), lambda i: (0, 0)),      # W1 (resident)
                pl.BlockSpec((1, MID), lambda i: (0, 0)),      # b1
                pl.BlockSpec((MID, D), lambda i: (0, 0)),      # W2*gamma
                pl.BlockSpec((1, D), lambda i: (0, 0)),        # beta@W2 + b2
            ],
            out_specs=pl.BlockSpec((tm, D), lambda i: (i, 0)),
        ),
        compiler_params=pltpu.CompilerParams(
            dimension_semantics=("parallel",)),
    )(x, w1_b, b1_r, w2_b, b2_f)

    return out.reshape(B, Nv, D)


def init_params(key, embed_dim, mid, embedding_dim):
    """Deterministic synthetic parameters matching the module's shapes."""
    k1, k2, k3, k4 = jax.random.split(key, 4)
    # nn.Linear default init: U(-1/sqrt(fan_in), 1/sqrt(fan_in))
    lim1 = 1.0 / (embed_dim ** 0.5)
    w1 = jax.random.uniform(k1, (embed_dim, mid), jnp.float32, -lim1, lim1)
    b1 = jax.random.uniform(k2, (mid,), jnp.float32, -lim1, lim1)
    # nn.LayerNorm default init: weight=1, bias=0 (perturbed in __main__ to
    # exercise the affine-fold path).
    gamma = jnp.ones((mid,), jnp.float32)
    beta = jnp.zeros((mid,), jnp.float32)
    lim2 = 1.0 / (mid ** 0.5)
    w2 = jax.random.uniform(k3, (mid, embedding_dim), jnp.float32, -lim2, lim2)
    b2 = jax.random.uniform(k4, (embedding_dim,), jnp.float32, -lim2, lim2)
    return w1, b1, gamma, beta, w2, b2


if __name__ == "__main__":
    # Small shapes consistent with the forward pass:
    #   B=2 images, Nv=16 patch tokens, H=128 (small proxy for DINOv2 vitb14
    #   embed_dim=768), MID=512 (fixed by module), D=512 embedding_dim.
    B, Nv, H = 2, 16, 128
    MID, D = 512, 512

    key = jax.random.PRNGKey(0)
    k_patch, k_params, k_g, k_b = jax.random.split(key, 4)

    # TODO(synk): the DINOv2 backbone (torch.hub pretrained ViT) has no Pallas
    # equivalent; feed synthetic patch embeddings in place of
    # model.get_intermediate_layers(x, n=1)[0].
    patches = jax.random.normal(k_patch, (B, Nv, H), jnp.float32)

    # TODO(synk): patch_dropout is a training-only ragged drop/repack; at eval
    # (inference forward) it is the identity, so it is omitted here.
    w1, b1, gamma, beta, w2, b2 = init_params(k_params, H, MID, D)
    # Non-trivial LayerNorm affine so the gamma/beta -> W2/b2 fold is tested.
    gamma = gamma + 0.1 * jax.random.normal(k_g, (MID,), jnp.float32)
    beta = 0.05 * jax.random.normal(k_b, (MID,), jnp.float32)

    visual_feats = vit_embedder_head(patches, w1, b1, gamma, beta, w2, b2)
    visual_feats = jax.block_until_ready(visual_feats)

    # Reference in plain JAX at the same precision policy (bf16 MXU operands,
    # f32 accumulation) but applying gamma/beta the standard (un-folded) way,
    # so the kernel's affine fold is checked.
    def ref(x):
        xb = x.reshape(B * Nv, H).astype(jnp.bfloat16)
        h = jnp.dot(xb, w1.astype(jnp.bfloat16),
                    preferred_element_type=jnp.float32) + b1
        mu = jnp.mean(h, axis=-1, keepdims=True)
        var = jnp.mean((h - mu) ** 2, axis=-1, keepdims=True)
        y = (h - mu) * jax.lax.rsqrt(var + 1e-5) * gamma + beta
        out = jnp.dot(y.astype(jnp.bfloat16), w2.astype(jnp.bfloat16),
                      preferred_element_type=jnp.float32) + b2
        return out.reshape(B, Nv, D)

    expected = ref(patches)
    assert visual_feats.shape == (B, Nv, D)
    assert jnp.allclose(visual_feats, expected, atol=2e-2, rtol=2e-2)

    print("KERNEL_OK")
</pallas_src>

<mosaic_0001>
module attributes {stable_mosaic.version = 11 : i64} {
  func.func @_vit_proj_kernel(%arg0: i32, %arg1: memref<32x128xf32, #tpu.memory_space<vmem>>, %arg2: memref<128x512xbf16, #tpu.memory_space<vmem>>, %arg3: memref<1x512xf32, #tpu.memory_space<vmem>>, %arg4: memref<512x512xbf16, #tpu.memory_space<vmem>>, %arg5: memref<1x512xf32, #tpu.memory_space<vmem>>, %arg6: memref<32x512xf32, #tpu.memory_space<vmem>>) attributes {dimension_semantics = [#tpu.dimension_semantics<parallel>], iteration_bounds = array<i64: 1>, scalar_prefetch = 0 : i64, scratch_operands = 0 : i64, tpu.core_type = #tpu.core_type<tc>, window_params = [{transform_indices = @transform_0, window_bounds = array<i64: 32, 128>}, {pipeline_mode = #tpu.pipeline_mode<synchronous>, transform_indices = @transform_1, window_bounds = array<i64: 128, 512>}, {pipeline_mode = #tpu.pipeline_mode<synchronous>, transform_indices = @transform_2, window_bounds = array<i64: 1, 512>}, {pipeline_mode = #tpu.pipeline_mode<synchronous>, transform_indices = @transform_3, window_bounds = array<i64: 512, 512>}, {pipeline_mode = #tpu.pipeline_mode<synchronous>, transform_indices = @transform_4, window_bounds = array<i64: 1, 512>}, {transform_indices = @transform_5, window_bounds = array<i64: 32, 512>}]} {
    %c0 = arith.constant 0 : index
    %c0_0 = arith.constant 0 : index
    %0 = vector.load %arg1[%c0, %c0_0] : memref<32x128xf32, #tpu.memory_space<vmem>>, vector<32x128xf32>
    %1 = arith.truncf %0 : vector<32x128xf32> to vector<32x128xbf16>
    %c0_1 = arith.constant 0 : index
    %c0_2 = arith.constant 0 : index
    %2 = vector.load %arg2[%c0_1, %c0_2] : memref<128x512xbf16, #tpu.memory_space<vmem>>, vector<128x512xbf16>
    %cst = arith.constant dense<0.000000e+00> : vector<32x512xf32>
    %3 = tpu.matmul %1, %2, %cst {dimension_numbers = #tpu.dot_dimension_numbers<[1], [0], [0], [1], [0, 0, 1, 1], [], []>} : vector<32x128xbf16>, vector<128x512xbf16>, vector<32x512xf32> -> vector<32x512xf32>
    %c0_3 = arith.constant 0 : index
    %c0_4 = arith.constant 0 : index
    %4 = vector.load %arg3[%c0_3, %c0_4] : memref<1x512xf32, #tpu.memory_space<vmem>>, vector<1x512xf32>
    %5 = vector.broadcast %4 : vector<1x512xf32> to vector<32x512xf32>
    %6 = arith.addf %3, %5 : vector<32x512xf32>
    %cst_5 = arith.constant dense<0.000000e+00> : vector<32xf32>
    %7 = vector.multi_reduction <add>, %6, %cst_5 [1] : vector<32x512xf32> to vector<32xf32>
    %8 = vector.shape_cast %7 : vector<32xf32> to vector<32x1xf32>
    %cst_6 = arith.constant 5.120000e+02 : f32
    %9 = vector.broadcast %cst_6 : f32 to vector<32x1xf32>
    %10 = arith.divf %8, %9 : vector<32x1xf32>
    %11 = vector.broadcast %10 : vector<32x1xf32> to vector<32x512xf32>
    %12 = arith.subf %6, %11 : vector<32x512xf32>
    %13 = arith.mulf %12, %12 : vector<32x512xf32>
    %cst_7 = arith.constant dense<0.000000e+00> : vector<32xf32>
    %14 = vector.multi_reduction <add>, %13, %cst_7 [1] : vector<32x512xf32> to vector<32xf32>
    %15 = vector.shape_cast %14 : vector<32xf32> to vector<32x1xf32>
    %cst_8 = arith.constant 5.120000e+02 : f32
    %16 = vector.broadcast %cst_8 : f32 to vector<32x1xf32>
    %17 = arith.divf %15, %16 : vector<32x1xf32>
    %cst_9 = arith.constant 9.99999974E-6 : f32
    %18 = vector.broadcast %cst_9 : f32 to vector<32x1xf32>
    %19 = arith.addf %17, %18 : vector<32x1xf32>
    %20 = math.rsqrt %19 : vector<32x1xf32>
    %21 = vector.broadcast %20 : vector<32x1xf32> to vector<32x512xf32>
    %22 = arith.mulf %12, %21 : vector<32x512xf32>
    %23 = arith.truncf %22 : vector<32x512xf32> to vector<32x512xbf16>
    %c0_10 = arith.constant 0 : index
    %c0_11 = arith.constant 0 : index
    %24 = vector.load %arg4[%c0_10, %c0_11] : memref<512x512xbf16, #tpu.memory_space<vmem>>, vector<512x512xbf16>
    %cst_12 = arith.constant dense<0.000000e+00> : vector<32x512xf32>
    %25 = tpu.matmul %23, %24, %cst_12 {dimension_numbers = #tpu.dot_dimension_numbers<[1], [0], [0], [1], [0, 0, 1, 1], [], []>} : vector<32x512xbf16>, vector<512x512xbf16>, vector<32x512xf32> -> vector<32x512xf32>
    %c0_13 = arith.constant 0 : index
    %c0_14 = arith.constant 0 : index
    %26 = vector.load %arg5[%c0_13, %c0_14] : memref<1x512xf32, #tpu.memory_space<vmem>>, vector<1x512xf32>
    %27 = vector.broadcast %26 : vector<1x512xf32> to vector<32x512xf32>
    %28 = arith.addf %25, %27 : vector<32x512xf32>
    %c0_15 = arith.constant 0 : index
    %c0_16 = arith.constant 0 : index
    %29 = vector.load %arg6[%c0_15, %c0_16] : memref<32x512xf32, #tpu.memory_space<vmem>>, vector<32x512xf32>
    tpu.vector_store %arg6[%c0_15, %c0_16], %28 {strides = array<i32>} : memref<32x512xf32, #tpu.memory_space<vmem>>, vector<32x512xf32>,
    return
  }
  func.func @transform_0(%arg0: i32) -> (i32, i32) {
    %c0_i32 = arith.constant 0 : i32
    %c0_i32_0 = arith.constant 0 : i32
    return %arg0, %c0_i32 : i32, i32
  }
  func.func @transform_1(%arg0: i32) -> (i32, i32) {
    %c0_i32 = arith.constant 0 : i32
    %c0_i32_0 = arith.constant 0 : i32
    %c0_i32_1 = arith.constant 0 : i32
    return %c0_i32, %c0_i32_0 : i32, i32
  }
  func.func @transform_2(%arg0: i32) -> (i32, i32) {
    %c0_i32 = arith.constant 0 : i32
    %c0_i32_0 = arith.constant 0 : i32
    %c0_i32_1 = arith.constant 0 : i32
    return %c0_i32, %c0_i32_0 : i32, i32
  }
  func.func @transform_3(%arg0: i32) -> (i32, i32) {
    %c0_i32 = arith.constant 0 : i32
    %c0_i32_0 = arith.constant 0 : i32
    %c0_i32_1 = arith.constant 0 : i32
    return %c0_i32, %c0_i32_0 : i32, i32
  }
  func.func @transform_4(%arg0: i32) -> (i32, i32) {
    %c0_i32 = arith.constant 0 : i32
    %c0_i32_0 = arith.constant 0 : i32
    %c0_i32_1 = arith.constant 0 : i32
    return %c0_i32, %c0_i32_0 : i32, i32
  }
  func.func @transform_5(%arg0: i32) -> (i32, i32) {
    %c0_i32 = arith.constant 0 : i32
    %c0_i32_0 = arith.constant 0 : i32
    return %arg0, %c0_i32 : i32, i32
  }
}

</mosaic_0001>

<bundles_post_ra>
// kernel: tpu_custom_call.1
= control target key start
LH: loop header
LB: loop body
LE: loop exit
PB: predicated region body
PF: predicated region fallthrough
CT: control target
= control target key end

     0   :  { %10 = vsyncpa [#allocation3], 0  ;;  %s2905_s0 = inlined_call_operand.hbm [shape: f32[32,128], index: 0, kind: input, shape index: {}]   ;;  %s2906_s1 = inlined_call_operand.hbm [shape: bf16[128,512], index: 1, kind: input, shape index: {}]   ;;  %s2907_s2 = inlined_call_operand.hbm [shape: f32[1,512], index: 2, kind: input, shape index: {}]   ;;  %s2908_s3 = inlined_call_operand.hbm [shape: bf16[512,512], index: 3, kind: input, shape index: {}]   ;;  %s2909_s4 = inlined_call_operand.hbm [shape: f32[1,512], index: 4, kind: input, shape index: {}]   ;;  %s2910_s5 = inlined_call_operand.hbm [shape: f32[32,512], index: 5, kind: output, shape index: {}]  }
   0x1   :  { %11 = vsyncpa [#allocation6], 0 }
   0x2   :  { %12 = vsyncpa [#allocation9], 0  ;;  %s31_s20 = sshll.u32 %s2906_s1, 4  ;;  %s32_s20 = int_to_ptr.hbm [resolvable:$true] %s31_s20 }
   0x3   :  { %13 = vsyncpa [#allocation4], 0  ;;  %s2628_s21 = smov [#allocation5]   ;;  %s55_s25 = sshll.u32 %s2908_s3, 4  ;;  %s56_s25 = int_to_ptr.hbm [resolvable:$true] %s55_s25 }
   0x4   :  { %s33_s22 = sshll.u32 %s2628_s21, 4  ;;  %s2629_s26 = smov 256   ;;  %s34_s22 = int_to_ptr.vmem [resolvable:$true] %s33_s22 }
   0x5   :  { %s2630_s27 = smov 16   ;;  %s2631_s28 = smov [#allocation8]  }
   0x6   :  { %39 = dma.hbm_to_vmem [thread:$0]  %s32_s20, 4096, %s34_s22, [#allocation6], %s2629_s26, %s2629_s26, %s2630_s27  }
   0x7   :  { %s57_s29 = sshll.u32 %s2631_s28, 4  ;;  %s18_s7 = sshll.u32 %s2905_s0, 4  ;;  %s58_s29 = int_to_ptr.vmem [resolvable:$true] %s57_s29  ;;  %s19_s7 = int_to_ptr.hbm [resolvable:$true] %s18_s7 }
   0x8   :  { %63 = dma.hbm_to_vmem [thread:$0]  %s56_s25, 16384, %s58_s29, [#allocation9], %s2629_s26, %s2629_s26, %s2630_s27  }
   0x9   :  { %s2632_s1 = smov [#allocation2]   ;;  %s45_s3 = sshll.u32 %s2907_s2, 4  ;;  %s46_s3 = int_to_ptr.hbm [resolvable:$true] %s45_s3 }
   0xa   :  { %s20_s8 = sshll.u32 %s2632_s1, 4  ;;  %s2633_s11 = smov 128   ;;  %s21_s8 = int_to_ptr.vmem [resolvable:$true] %s20_s8 }
   0xb   :  { %s2634_s12 = smov 8   ;;  %s2635_s13 = smov [#allocation7]  }
   0xc   :  { %26 = dma.hbm_to_vmem [thread:$0]  %s19_s7, 512, %s21_s8, [#allocation3], %s2633_s11, %s2633_s11, %s2634_s12  }
   0xd   :  { %s47_s14 = sshll.u32 %s2635_s13, 4  ;;  %s69_s0 = sshll.u32 %s2909_s4, 4  ;;  %s48_s14 = int_to_ptr.vmem [resolvable:$true] %s47_s14  ;;  %s70_s0 = int_to_ptr.hbm [resolvable:$true] %s69_s0 }
   0xe   :  { %50 = dma.hbm_to_vmem [thread:$0]  %s46_s3, 64, %s48_s14, [#allocation6]  }
   0xf   :  { %s2636_s17 = smov [#allocation10]  }
  0x10   :  { %s71_s18 = sshll.u32 %s2636_s17, 4  ;;  %s72_s18 = int_to_ptr.vmem [resolvable:$true] %s71_s18 }
  0x11   :  { %74 = dma.hbm_to_vmem [thread:$0]  %s70_s0, 64, %s72_s18, [#allocation9]  }
  0x12   :  { %2620 = dma.done.wait [#allocation3], 512  }
  0x13   :  { %2621 = vsyncadd [#allocation3], 4294966784 }
  0x14   :  { %2622 = dma.done.wait [#allocation6], 4160  }
  0x15   :  { %2623 = vsyncadd [#allocation6], 4294963136 }
  0x16   :  { %2624 = dma.done.wait [#allocation9], 16448  }
  0x17   :  { %2625 = vsyncadd [#allocation9], 4294950848  ;;  %v1767_v0 = vld [vmem:[#allocation5 + $0xe0] sm:$0xf]  ;;  %v2323_v1 = vld [vmem:[#allocation5 + $0xec] sm:$0xf0] }
  0x18   :  { %v2321_v2 = vld [vmem:[#allocation5 + $0xe4] sm:$0xf]  ;;  %v1768_v3 = vor.u32 %v2323_v1, %v1767_v0  ;;  %v1769_v4 = vld [vmem:[#allocation5 + $0xf0] sm:$0xf0]  ;;  %v1775_v5 = vld [vmem:[#allocation5 + $0xe8] sm:$0xf] }
  0x19   :  { %v2324_v6 = vld [vmem:[#allocation5 + $0xf4] sm:$0xf0]  ;;  %v1772_v7 = vor.u32 %v2321_v2, %v1769_v4  ;;  %v2322_v9 = vld [vmem:[#allocation5 + $0xec] sm:$0xf]  ;;  %v1777_v10 = vld [vmem:[#allocation5 + $0xf8] sm:$0xf0] }
  0x1a   :  { %v1776_v8 = vor.u32 %v2324_v6, %v1775_v5  ;;  %v1751_v11 = vld [vmem:[#allocation5 + $0xc0] sm:$0xf]  ;;  %303 = vmatpush.bf16.msra.mxu0 %v1768_v3  ;;  %v1780_v12 = vor.u32 %v2322_v9, %v1777_v10  ;;  %v2319_v13 = vld [vmem:[#allocation5 + $0xcc] sm:$0xf0]  ;;  %v2317_v14 = vld [vmem:[#allocation5 + $0xc4] sm:$0xf] }
  0x1b   :  { %v1753_v15 = vld [vmem:[#allocation5 + $0xd0] sm:$0xf0]  ;;  %322 = vmatpush.bf16.msra.mxu1 %v1772_v7  ;;  %v1752_v16 = vor.u32 %v2319_v13, %v1751_v11  ;;  %v1759_v18 = vld [vmem:[#allocation5 + $0xc8] sm:$0xf]  ;;  %v2320_v19 = vld [vmem:[#allocation5 + $0xd4] sm:$0xf0] }
  0x1c   :  { %341 = vmatpush.bf16.msra.mxu2 %v1776_v8  ;;  %v1756_v17 = vor.u32 %v2317_v14, %v1753_v15  ;;  %v2318_v20 = vld [vmem:[#allocation5 + $0xcc] sm:$0xf]  ;;  %360 = vmatpush.bf16.msra.mxu3 %v1780_v12  ;;  %v1760_v21 = vor.u32 %v2320_v19, %v1759_v18  ;;  %v1761_v22 = vld [vmem:[#allocation5 + $0xd8] sm:$0xf0]  ;;  %v1735_v23 = vld [vmem:[#allocation5 + $0xa0] sm:$0xf] }
  0x1d   :  { %v2315_v24 = vld [vmem:[#allocation5 + $0xac] sm:$0xf0]  ;;  %v1764_v25 = vor.u32 %v2318_v20, %v1761_v22  ;;  %v2313_v26 = vld [vmem:[#allocation5 + $0xa4] sm:$0xf]  ;;  %v1737_v27 = vld [vmem:[#allocation5 + $0xb0] sm:$0xf0] }
  0x1e   :  { %v1743_v28 = vld [vmem:[#allocation5 + $0xa8] sm:$0xf]  ;;  %304 = vmatpush.bf16.msra.mxu0 %v1752_v16  ;;  %v1736_v29 = vor.u32 %v2315_v24, %v1735_v23  ;;  %v2316_v30 = vld [vmem:[#allocation5 + $0xb4] sm:$0xf0]  ;;  %v2314_v31 = vld [vmem:[#allocation5 + $0xac] sm:$0xf]  ;;  %v1740_v33 = vor.u32 %v2313_v26, %v1737_v27 }
  0x1f   :  { %v1745_v32 = vld [vmem:[#allocation5 + $0xb8] sm:$0xf0]  ;;  %323 = vmatpush.bf16.msra.mxu1 %v1756_v17  ;;  %v1744_v34 = vor.u32 %v2316_v30, %v1743_v28  ;;  %v1719_v35 = vld [vmem:[#allocation5 + $0x80] sm:$0xf]  ;;  %v2311_v36 = vld [vmem:[#allocation5 + $0x8c] sm:$0xf0] }
  0x20   :  { %342 = vmatpush.bf16.msra.mxu2 %v1760_v21  ;;  %v2309_v37 = vld [vmem:[#allocation5 + $0x84] sm:$0xf]  ;;  %361 = vmatpush.bf16.msra.mxu3 %v1764_v25  ;;  %v1748_v38 = vor.u32 %v2314_v31, %v1745_v32  ;;  %v1721_v39 = vld [vmem:[#allocation5 + $0x90] sm:$0xf0]  ;;  %v1727_v40 = vld [vmem:[#allocation5 + $0x88] sm:$0xf]  ;;  %v1720_v44 = vor.u32 %v2311_v36, %v1719_v35 }
  0x21   :  { %v2312_v41 = vld [vmem:[#allocation5 + $0x94] sm:$0xf0]  ;;  %v2310_v42 = vld [vmem:[#allocation5 + $0x8c] sm:$0xf]  ;;  %v1729_v43 = vld [vmem:[#allocation5 + $0x98] sm:$0xf0]  ;;  %v1724_v45 = vor.u32 %v2309_v37, %v1721_v39 }
  0x22   :  { %305 = vmatpush.bf16.msra.mxu0 %v1736_v29  ;;  %v1728_v46 = vor.u32 %v2312_v41, %v1727_v40  ;;  %v1703_v47 = vld [vmem:[#allocation5 + $0x60] sm:$0xf]  ;;  %v2307_v48 = vld [vmem:[#allocation5 + $0x6c] sm:$0xf0]  ;;  %v2305_v49 = vld [vmem:[#allocation5 + $0x64] sm:$0xf]  ;;  %v1732_v50 = vor.u32 %v2310_v42, %v1729_v43 }
  0x23   :  { %324 = vmatpush.bf16.msra.mxu1 %v1740_v33  ;;  %v1705_v51 = vld [vmem:[#allocation5 + $0x70] sm:$0xf0]  ;;  %v1711_v52 = vld [vmem:[#allocation5 + $0x68] sm:$0xf]  ;;  %v2308_v53 = vld [vmem:[#allocation5 + $0x74] sm:$0xf0]  ;;  %v1704_v56 = vor.u32 %v2307_v48, %v1703_v47 }
  0x24   :  { %343 = vmatpush.bf16.msra.mxu2 %v1744_v34  ;;  %362 = vmatpush.bf16.msra.mxu3 %v1748_v38  ;;  %v2306_v54 = vld [vmem:[#allocation5 + $0x6c] sm:$0xf]  ;;  %v1713_v55 = vld [vmem:[#allocation5 + $0x78] sm:$0xf0]  ;;  %v1708_v57 = vor.u32 %v2305_v49, %v1705_v51  ;;  %v1712_v58 = vor.u32 %v2308_v53, %v1711_v52  ;;  %v1687_v59 = vld [vmem:[#allocation5 + $0x40] sm:$0xf] }
  0x25   :  { %v2303_v60 = vld [vmem:[#allocation5 + $0x4c] sm:$0xf0]  ;;  %v2301_v61 = vld [vmem:[#allocation5 + $0x44] sm:$0xf]  ;;  %v1716_v62 = vor.u32 %v2306_v54, %v1713_v55  ;;  %v1689_v63 = vld [vmem:[#allocation5 + $0x50] sm:$0xf0] }
  0x26   :  { %306 = vmatpush.bf16.msra.mxu0 %v1720_v44  ;;  %v1695_v0 = vld [vmem:[#allocation5 + $0x48] sm:$0xf]  ;;  %v2304_v1 = vld [vmem:[#allocation5 + $0x54] sm:$0xf0]  ;;  %v2302_v2 = vld [vmem:[#allocation5 + $0x4c] sm:$0xf]  ;;  %v1688_v4 = vor.u32 %v2303_v60, %v1687_v59  ;;  %v1692_v5 = vor.u32 %v2301_v61, %v1689_v63 }
  0x27   :  { %325 = vmatpush.bf16.msra.mxu1 %v1724_v45  ;;  %v1697_v3 = vld [vmem:[#allocation5 + $0x58] sm:$0xf0]  ;;  %v1696_v6 = vor.u32 %v2304_v1, %v1695_v0  ;;  %v1671_v7 = vld [vmem:[#allocation5 + $0x20] sm:$0xf]  ;;  %v2299_v8 = vld [vmem:[#allocation5 + $0x2c] sm:$0xf0] }
  0x28   :  { %344 = vmatpush.bf16.msra.mxu2 %v1728_v46  ;;  %363 = vmatpush.bf16.msra.mxu3 %v1732_v50  ;;  %v2297_v9 = vld [vmem:[#allocation5 + $0x24] sm:$0xf]  ;;  %v1700_v10 = vor.u32 %v2302_v2, %v1697_v3  ;;  %v1673_v11 = vld [vmem:[#allocation5 + $0x30] sm:$0xf0]  ;;  %v1679_v12 = vld [vmem:[#allocation5 + $0x28] sm:$0xf]  ;;  %v1672_v16 = vor.u32 %v2299_v8, %v1671_v7 }
  0x29   :  { %v2300_v13 = vld [vmem:[#allocation5 + $0x34] sm:$0xf0]  ;;  %v2298_v14 = vld [vmem:[#allocation5 + $0x2c] sm:$0xf]  ;;  %v1681_v15 = vld [vmem:[#allocation5 + $0x38] sm:$0xf0]  ;;  %v1676_v17 = vor.u32 %v2297_v9, %v1673_v11 }
  0x2a   :  { %307 = vmatpush.bf16.msra.mxu0 %v1704_v56  ;;  %v1680_v18 = vor.u32 %v2300_v13, %v1679_v12  ;;  %v1655_v19 = vld [vmem:[#allocation5] sm:$0xf]  ;;  %v2295_v20 = vld [vmem:[#allocation5 + $0xc] sm:$0xf0]  ;;  %v2293_v21 = vld [vmem:[#allocation5 + $0x4] sm:$0xf]  ;;  %v1684_v22 = vor.u32 %v2298_v14, %v1681_v15 }
  0x2b   :  { %326 = vmatpush.bf16.msra.mxu1 %v1708_v57  ;;  %v1657_v23 = vld [vmem:[#allocation5 + $0x10] sm:$0xf0]  ;;  %v1663_v24 = vld [vmem:[#allocation5 + $0x8] sm:$0xf]  ;;  %v2296_v25 = vld [vmem:[#allocation5 + $0x14] sm:$0xf0]  ;;  %v1656_v28 = vor.u32 %v2295_v20, %v1655_v19 }
  0x2c   :  { %345 = vmatpush.bf16.msra.mxu2 %v1712_v58  ;;  %364 = vmatpush.bf16.msra.mxu3 %v1716_v62  ;;  %v2294_v26 = vld [vmem:[#allocation5 + $0xc] sm:$0xf]  ;;  %v1665_v27 = vld [vmem:[#allocation5 + $0x18] sm:$0xf0]  ;;  %v95_v29 = vld [vmem:[#allocation2] sm:$0xff]  ;;  %v1660_v31 = vor.u32 %v2293_v21, %v1657_v23  ;;  %v1664_v32 = vor.u32 %v2296_v25, %v1663_v24  ;;  %v2637_v23 = vmov 512.0  }
  0x2d   :  { %v96_v30 = vld [vmem:[#allocation2 + $0x8] sm:$0xff]  ;;  %v1668_v33 = vor.u32 %v2294_v26, %v1665_v27  ;;  %v97_v35 = vld [vmem:[#allocation2 + $0x10] sm:$0xff]  ;;  %v98_v36 = vld [vmem:[#allocation2 + $0x18] sm:$0xff]  ;;  %2466 = vrcp.f32 %v2637_v23  ;;  %s2638_s2 = smov [#allocation11]   ;;  %s1638_s21 = sshll.u32 %s2910_s5, 4  ;;  %s1639_s21 = int_to_ptr.hbm [resolvable:$true] %s1638_s21 }
  0x2e   :  { %308 = vmatpush.bf16.msra.mxu0 %v1688_v4  ;;  %v99_v34 = vpack.c.bf16 %v96_v30, %v95_v29  ;;  %v100_v37 = vpack.c.bf16 %v98_v36, %v97_v35  ;;  %v133_v38 = vld [vmem:[#allocation7] sm:$0xf]  ;;  %v2023_v23 = vld [vmem:[#allocation8 + $0x1e0] sm:$0xf]  ;;  %s1636_s4 = sshll.u32 %s2638_s2, 4  ;;  %s2639_s22 = smov 512   ;;  %s1637_s4 = int_to_ptr.vmem [resolvable:$true] %s1636_s4 }
  0x2f   :  { %327 = vmatpush.bf16.msra.mxu1 %v1692_v5  ;;  %v135_v39 = vperm.slane %v133_v38, 0  ;;  %v136_v40 = vperm.slane %v133_v38, 1  ;;  %v137_v45 = vperm.slane %v133_v38, 2  ;;  %v138_v46 = vperm.slane %v133_v38, 3  ;;  %s2640_s23 = smov 32  }
  0x30   :  { %346 = vmatpush.bf16.msra.mxu2 %v1696_v6  ;;  %365 = vmatpush.bf16.msra.mxu3 %v1700_v10 }
  0x32   :  { %309 = vmatpush.bf16.msra.mxu0 %v1672_v16 }
  0x33   :  { %328 = vmatpush.bf16.msra.mxu1 %v1676_v17  ;;  %v2467_v24 = vpop.eup %2466 }
  0x34   :  { %347 = vmatpush.bf16.msra.mxu2 %v1680_v18  ;;  %366 = vmatpush.bf16.msra.mxu3 %v1684_v22  ;;  %v400_v25 = vmul.f32 512.0, %v2467_v24  ;;  %vm404_vm0 = vweird.f32 %v2467_v24 }
  0x36   :  { %310 = vmatpush.bf16.msra.mxu0 %v1656_v28  ;;  %v401_v26 = vsub.f32 1.0, %v400_v25 }
  0x37   :  { %329 = vmatpush.bf16.msra.mxu1 %v1660_v31 }
  0x38   :  { %348 = vmatpush.bf16.msra.mxu2 %v1664_v32  ;;  %367 = vmatpush.bf16.msra.mxu3 %v1668_v33  ;;  %v402_v27 = vmul.f32 %v2467_v24, %v401_v26 }
  0x39   :  { %311 = vmatmul.bf16.vlgmr.msra.gmra.mxu0 %v99_v34 }
  0x3a   :  { %330 = vmatmul.bf16.vlgmr.msra.gmra.mxu1 %v99_v34  ;;  %v403_v28 = vadd.f32 %v2467_v24, %v402_v27  ;;  %v2279_v27 = vld [vmem:[#allocation8 + $0x3e0] sm:$0xf] }
  0x3b   :  { %349 = vmatmul.bf16.vlgmr.msra.gmra.mxu2 %v99_v34  ;;  %368 = vmatmul.bf16.vlgmr.msra.gmra.mxu3 %v99_v34 }
  0x3c   :  { %v2692_v29 = vsel %vm404_vm0, %v2467_v24, %v403_v28  ;;  %v2387_v24 = vld [vmem:[#allocation8 + $0x1ec] sm:$0xf0] }
  0x3d   :  { %v2024_v26 = vor.u32 %v2387_v24, %v2023_v23  ;;  %v2451_v28 = vld [vmem:[#allocation8 + $0x3ec] sm:$0xf0]  ;;  %v1959_v24 = vld [vmem:[#allocation8 + $0x160] sm:$0xf] }
  0x3e   :  { %v2339_v23 = vld [vmem:[#allocation8 + $0x6c] sm:$0xf0] }
  0x3f   :  { %1331 = vmatpush.bf16.msrb.mxu1 %v2024_v26 }
  0x49   :  { %316 = vmatmul.bf16.gmra.mxu0 %v100_v37 }
  0x4a   :  { %335 = vmatmul.bf16.gmra.mxu1 %v100_v37 }
  0x4b   :  { %354 = vmatmul.bf16.gmra.mxu2 %v100_v37  ;;  %373 = vmatmul.bf16.gmra.mxu3 %v100_v37 }
  0xb6   :  { %v312_v41 = vpop.f32.mrf.mxu0 }
  0xb7   :  { %v331_v42 = vpop.f32.mrf.mxu1  ;;  %v313_v43 = vadd.f32 %v312_v41, %v135_v39 }
  0xb8   :  { %v332_v44 = vadd.f32 %v331_v42, %v136_v40 }
  0xba   :  { %v379_v47 = vadd.f32 %v332_v44, %v313_v43 }
  0xbe   :  { %v350_v48 = vpop.f32.mrf.mxu2  ;;  %v369_v50 = vpop.f32.mrf.mxu3 }
  0xbf   :  { %v351_v49 = vadd.f32 %v350_v48, %v137_v45  ;;  %v314_v51 = vpop.f32.mrf.mxu0  ;;  %v370_v52 = vadd.f32 %v369_v50, %v138_v46  ;;  %v333_v53 = vpop.f32.mrf.mxu1 }
  0xc0   :  { %v315_v55 = vadd.f32 %v314_v51, %v135_v39  ;;  %v334_v56 = vadd.f32 %v333_v53, %v136_v40 }
  0xc1   :  { %v380_v54 = vadd.f32 %v379_v47, %v351_v49 }
  0xc2   :  { %v384_v59 = vadd.f32 %v334_v56, %v315_v55 }
  0xc3   :  { %v381_v57 = vadd.f32 %v380_v54, %v370_v52 }
  0xc5   :  { %382 = vadd.xlane.f32.xlu0 %v381_v57 }
  0xc6   :  { %v352_v58 = vpop.f32.mrf.mxu2  ;;  %v371_v61 = vpop.f32.mrf.mxu3 }
  0xc7   :  { %v353_v60 = vadd.f32 %v352_v58, %v137_v45  ;;  %v317_v62 = vpop.f32.mrf.mxu0  ;;  %v336_v63 = vpop.f32.mrf.mxu1  ;;  %v372_v1 = vadd.f32 %v371_v61, %v138_v46 }
  0xc8   :  { %v318_v2 = vadd.f32 %v317_v62, %v135_v39  ;;  %v337_v3 = vadd.f32 %v336_v63, %v136_v40 }
  0xc9   :  { %v385_v0 = vadd.f32 %v384_v59, %v353_v60 }
  0xca   :  { %v389_v5 = vadd.f32 %v337_v3, %v318_v2 }
  0xcb   :  { %v386_v4 = vadd.f32 %v385_v0, %v372_v1 }
  0xcd   :  { %387 = vadd.xlane.f32.xlu0 %v386_v4 }
  0xce   :  { %v355_v6 = vpop.f32.mrf.mxu2  ;;  %v374_v8 = vpop.f32.mrf.mxu3 }
  0xcf   :  { %v356_v7 = vadd.f32 %v355_v6, %v137_v45  ;;  %v375_v9 = vadd.f32 %v374_v8, %v138_v46  ;;  %v319_v10 = vpop.f32.mrf.mxu0  ;;  %v338_v11 = vpop.f32.mrf.mxu1 }
  0xd0   :  { %v2686_v13 = vadd.f32 %v319_v10, %v135_v39  ;;  %v2688_v14 = vadd.f32 %v338_v11, %v136_v40 }
  0xd1   :  { %v390_v12 = vadd.f32 %v389_v5, %v356_v7 }
  0xd2   :  { %v394_v17 = vadd.f32 %v2688_v14, %v2686_v13 }
  0xd3   :  { %v391_v15 = vadd.f32 %v390_v12, %v375_v9 }
  0xd5   :  { %392 = vadd.xlane.f32.xlu1 %v391_v15 }
  0xd6   :  { %v357_v16 = vpop.f32.mrf.mxu2  ;;  %v376_v19 = vpop.f32.mrf.mxu3 }
  0xd7   :  { %v358_v18 = vadd.f32 %v357_v16, %v137_v45  ;;  %v377_v21 = vadd.f32 %v376_v19, %v138_v46  ;;  %v2419_v19 = vld [vmem:[#allocation8 + $0x2ec] sm:$0xf0] }
  0xd9   :  { %v395_v20 = vadd.f32 %v394_v17, %v358_v18 }
  0xdb   :  { %v396_v22 = vadd.f32 %v395_v20, %v377_v21  ;;  %v1895_v20 = vld [vmem:[#allocation8 + $0xe0] sm:$0xf] }
  0xdd   :  { %397 = vadd.xlane.f32.xlu1 %v396_v22  ;;  %v2355_v22 = vld [vmem:[#allocation8 + $0xec] sm:$0xf0] }
  0xde   :  { %v1896_v25 = vor.u32 %v2355_v22, %v1895_v20  ;;  %v2403_v20 = vld [vmem:[#allocation8 + $0x26c] sm:$0xf0] }
  0xe0   :  { %1312 = vmatpush.bf16.msrb.mxu0 %v1896_v25  ;;  %v2371_v25 = vld [vmem:[#allocation8 + $0x16c] sm:$0xf0] }
 0x138   :  { %v383_v30 = vpop.xlane.xlu0 %382 }
 0x139   :  { %v406_v31 = vmul.f32 %v2692_v29, %v383_v30  ;;  %v2280_v30 = vor.u32 %v2451_v28, %v2279_v27  ;;  %v1960_v27 = vor.u32 %v2371_v25, %v1959_v24  ;;  %v2215_v28 = vld [vmem:[#allocation8 + $0x360] sm:$0xf]  ;;  %v2353_v24 = vld [vmem:[#allocation8 + $0xe4] sm:$0xf] }
 0x13b   :  { %v2695_v32 = vsub.f32 %v313_v43, %v406_v31  ;;  %v2697_v33 = vsub.f32 %v332_v44, %v406_v31  ;;  %v2699_v34 = vsub.f32 %v351_v49, %v406_v31  ;;  %v2701_v35 = vsub.f32 %v370_v52, %v406_v31  ;;  %v2135_v31 = vld [vmem:[#allocation8 + $0x2c0] sm:$0xf]  ;;  %1369 = vmatpush.bf16.msrb.mxu3 %v2280_v30  ;;  %v2435_v30 = vld [vmem:[#allocation8 + $0x36c] sm:$0xf0] }
 0x13d   :  { %v426_v36 = vmul.f32 %v2695_v32, %v2695_v32  ;;  %v427_v37 = vmul.f32 %v2697_v33, %v2697_v33  ;;  %v428_v38 = vmul.f32 %v2699_v34, %v2699_v34  ;;  %v429_v42 = vmul.f32 %v2701_v35, %v2701_v35 }
 0x13f   :  { %v442_v39 = vadd.f32 %v427_v37, %v426_v36  ;;  %v2415_v36 = vld [vmem:[#allocation8 + $0x2cc] sm:$0xf0]  ;;  %v1879_v37 = vld [vmem:[#allocation8 + $0xc0] sm:$0xf] }
 0x140   :  { %v388_v40 = vpop.xlane.xlu0 %387 }
 0x141   :  { %v407_v41 = vmul.f32 %v2692_v29, %v388_v40  ;;  %v443_v43 = vadd.f32 %v442_v39, %v428_v38  ;;  %v2136_v38 = vor.u32 %v2415_v36, %v2135_v31  ;;  %v2351_v39 = vld [vmem:[#allocation8 + $0xcc] sm:$0xf0]  ;;  %v2007_v40 = vld [vmem:[#allocation8 + $0x1c0] sm:$0xf]  ;;  %v2216_v31 = vor.u32 %v2435_v30, %v2215_v28  ;;  %v2385_v28 = vld [vmem:[#allocation8 + $0x1e4] sm:$0xf] }
 0x142   :  { %v2071_v36 = vld [vmem:[#allocation8 + $0x240] sm:$0xf] }
 0x143   :  { %v2712_v44 = vsub.f32 %v315_v55, %v407_v41  ;;  %v2714_v45 = vsub.f32 %v334_v56, %v407_v41  ;;  %v444_v46 = vadd.f32 %v443_v43, %v429_v42  ;;  %v2716_v47 = vsub.f32 %v353_v60, %v407_v41 }
 0x144   :  { %v2718_v48 = vsub.f32 %v372_v1, %v407_v41  ;;  %v2383_v41 = vld [vmem:[#allocation8 + $0x1cc] sm:$0xf0]  ;;  %v1880_v42 = vor.u32 %v2351_v39, %v1879_v37 }
 0x145   :  { %445 = vadd.xlane.f32.xlu2 %v444_v46  ;;  %v430_v49 = vmul.f32 %v2712_v44, %v2712_v44  ;;  %v431_v50 = vmul.f32 %v2714_v45, %v2714_v45  ;;  %v432_v51 = vmul.f32 %v2716_v47, %v2716_v47  ;;  %v2008_v43 = vor.u32 %v2383_v41, %v2007_v40  ;;  %v2263_v46 = vld [vmem:[#allocation8 + $0x3c0] sm:$0xf]  ;;  %v2399_v37 = vld [vmem:[#allocation8 + $0x24c] sm:$0xf0] }
 0x146   :  { %v433_v55 = vmul.f32 %v2718_v48, %v2718_v48  ;;  %1313 = vmatpush.bf16.msrb.mxu0 %v1880_v42  ;;  %v2072_v39 = vor.u32 %v2399_v37, %v2071_v36  ;;  %v2335_v40 = vld [vmem:[#allocation8 + $0x4c] sm:$0xf0]  ;;  %v1943_v41 = vld [vmem:[#allocation8 + $0x140] sm:$0xf]  ;;  %v2449_v36 = vld [vmem:[#allocation8 + $0x3e4] sm:$0xf] }
 0x147   :  { %v447_v52 = vadd.f32 %v431_v50, %v430_v49  ;;  %v2447_v49 = vld [vmem:[#allocation8 + $0x3cc] sm:$0xf0]  ;;  %1332 = vmatpush.bf16.msrb.mxu1 %v2008_v43  ;;  %v2281_v37 = vld [vmem:[#allocation8 + $0x3f0] sm:$0xf0] }
 0x148   :  { %v393_v53 = vpop.xlane.xlu1 %392  ;;  %v2264_v50 = vor.u32 %v2447_v49, %v2263_v46  ;;  %v2367_v42 = vld [vmem:[#allocation8 + $0x14c] sm:$0xf0]  ;;  %v2199_v49 = vld [vmem:[#allocation8 + $0x340] sm:$0xf] }
 0x149   :  { %v408_v54 = vmul.f32 %v2692_v29, %v393_v53  ;;  %v448_v56 = vadd.f32 %v447_v52, %v432_v51  ;;  %v2119_v51 = vld [vmem:[#allocation8 + $0x2a0] sm:$0xf]  ;;  %v2411_v52 = vld [vmem:[#allocation8 + $0x2ac] sm:$0xf0]  ;;  %v1944_v46 = vor.u32 %v2367_v42, %v1943_v41  ;;  %v2137_v41 = vld [vmem:[#allocation8 + $0x2d0] sm:$0xf0] }
 0x14a   :  { %v1863_v53 = vld [vmem:[#allocation8 + $0xa0] sm:$0xf]  ;;  %1370 = vmatpush.bf16.msrb.mxu3 %v2264_v50  ;;  %v2431_v50 = vld [vmem:[#allocation8 + $0x34c] sm:$0xf0]  ;;  %v2349_v42 = vld [vmem:[#allocation8 + $0xc4] sm:$0xf] }
 0x14b   :  { %v2729_v57 = vsub.f32 %v318_v2, %v408_v54  ;;  %v2731_v58 = vsub.f32 %v337_v3, %v408_v54  ;;  %v449_v59 = vadd.f32 %v448_v56, %v433_v55  ;;  %v2733_v60 = vsub.f32 %v356_v7, %v408_v54  ;;  %v2347_v55 = vld [vmem:[#allocation8 + $0xac] sm:$0xf0]  ;;  %v1991_v56 = vld [vmem:[#allocation8 + $0x1a0] sm:$0xf] }
 0x14c   :  { %v2735_v61 = vsub.f32 %v375_v9, %v408_v54  ;;  %v2120_v54 = vor.u32 %v2411_v52, %v2119_v51  ;;  %v2200_v51 = vor.u32 %v2431_v50, %v2199_v49  ;;  %v2055_v52 = vld [vmem:[#allocation8 + $0x220] sm:$0xf]  ;;  %v2381_v49 = vld [vmem:[#allocation8 + $0x1c4] sm:$0xf]  ;;  %v2009_v50 = vld [vmem:[#allocation8 + $0x1d0] sm:$0xf0] }
 0x14d   :  { %450 = vadd.xlane.f32.xlu2 %v449_v59  ;;  %v434_v62 = vmul.f32 %v2729_v57, %v2729_v57  ;;  %v435_v63 = vmul.f32 %v2731_v58, %v2731_v58  ;;  %v436_v0 = vmul.f32 %v2733_v60, %v2733_v60  ;;  %v2379_v59 = vld [vmem:[#allocation8 + $0x1ac] sm:$0xf0] }
 0x14e   :  { %v437_v4 = vmul.f32 %v2735_v61, %v2735_v61 }
 0x14f   :  { %v452_v1 = vadd.f32 %v435_v63, %v434_v62  ;;  %v1864_v62 = vor.u32 %v2347_v55, %v1863_v53  ;;  %v1992_v63 = vor.u32 %v2379_v59, %v1991_v56  ;;  %v2395_v53 = vld [vmem:[#allocation8 + $0x22c] sm:$0xf0]  ;;  %v1927_v59 = vld [vmem:[#allocation8 + $0x120] sm:$0xf] }
 0x150   :  { %v398_v2 = vpop.xlane.xlu1 %397  ;;  %v2056_v55 = vor.u32 %v2395_v53, %v2055_v52  ;;  %v2331_v56 = vld [vmem:[#allocation8 + $0x2c] sm:$0xf0]  ;;  %v2012_v53 = vor.u32 %v2381_v49, %v2009_v50  ;;  %v2337_v49 = vld [vmem:[#allocation8 + $0x64] sm:$0xf]  ;;  %v1833_v50 = vld [vmem:[#allocation8 + $0x70] sm:$0xf0] }
 0x151   :  { %v409_v3 = vmul.f32 %v2692_v29, %v398_v2  ;;  %v453_v5 = vadd.f32 %v452_v1, %v436_v0  ;;  %v2247_v0 = vld [vmem:[#allocation8 + $0x3a0] sm:$0xf]  ;;  %v2443_v1 = vld [vmem:[#allocation8 + $0x3ac] sm:$0xf0]  ;;  %1314 = vmatpush.bf16.msrb.mxu0 %v1864_v62  ;;  %1333 = vmatpush.bf16.msrb.mxu1 %v1992_v63 }
 0x152   :  { %v2248_v2 = vor.u32 %v2443_v1, %v2247_v0  ;;  %v2363_v62 = vld [vmem:[#allocation8 + $0x12c] sm:$0xf0]  ;;  %v2183_v1 = vld [vmem:[#allocation8 + $0x320] sm:$0xf] }
 0x153   :  { %v2747_v6 = vsub.f32 %v2686_v13, %v409_v3  ;;  %v2750_v7 = vsub.f32 %v2688_v14, %v409_v3  ;;  %v454_v8 = vadd.f32 %v453_v5, %v437_v4  ;;  %v2752_v9 = vsub.f32 %v358_v18, %v409_v3  ;;  %v2151_v18 = vld [vmem:[#allocation8 + $0x2e0] sm:$0xf]  ;;  %v2407_v4 = vld [vmem:[#allocation8 + $0x28c] sm:$0xf0] }
 0x154   :  { %v2754_v10 = vsub.f32 %v377_v21, %v409_v3  ;;  %v2152_v21 = vor.u32 %v2419_v19, %v2151_v18  ;;  %v2103_v3 = vld [vmem:[#allocation8 + $0x280] sm:$0xf]  ;;  %1371 = vmatpush.bf16.msrb.mxu3 %v2248_v2  ;;  %v1928_v0 = vor.u32 %v2363_v62, %v1927_v59  ;;  %v2427_v2 = vld [vmem:[#allocation8 + $0x32c] sm:$0xf0]  ;;  %v2409_v62 = vld [vmem:[#allocation8 + $0x2a4] sm:$0xf] }
 0x155   :  { %455 = vadd.xlane.f32.xlu0 %v454_v8  ;;  %v438_v11 = vmul.f32 %v2747_v6, %v2747_v6  ;;  %v439_v12 = vmul.f32 %v2750_v7, %v2750_v7  ;;  %v440_v15 = vmul.f32 %v2752_v9, %v2752_v9  ;;  %v1847_v5 = vld [vmem:[#allocation8 + $0x80] sm:$0xf]  ;;  %v2104_v8 = vor.u32 %v2407_v4, %v2103_v3 }
 0x156   :  { %v441_v14 = vmul.f32 %v2754_v10, %v2754_v10  ;;  %1350 = vmatpush.bf16.msrb.mxu2 %v2152_v21  ;;  %v2087_v19 = vld [vmem:[#allocation8 + $0x260] sm:$0xf]  ;;  %v2184_v3 = vor.u32 %v2427_v2, %v2183_v1 }
 0x157   :  { %v457_v13 = vadd.f32 %v439_v12, %v438_v11  ;;  %v2343_v11 = vld [vmem:[#allocation8 + $0x8c] sm:$0xf0]  ;;  %v1975_v12 = vld [vmem:[#allocation8 + $0x180] sm:$0xf]  ;;  %v2088_v22 = vor.u32 %v2403_v20, %v2087_v19 }
 0x158   :  { %v1831_v21 = vld [vmem:[#allocation8 + $0x60] sm:$0xf]  ;;  %v2423_v19 = vld [vmem:[#allocation8 + $0x30c] sm:$0xf0] }
 0x159   :  { %v458_v16 = vadd.f32 %v457_v13, %v440_v15  ;;  %v2375_v15 = vld [vmem:[#allocation8 + $0x18c] sm:$0xf0]  ;;  %v1848_v13 = vor.u32 %v2343_v11, %v1847_v5  ;;  %v1832_v26 = vor.u32 %v2339_v23, %v1831_v21  ;;  %v2039_v4 = vld [vmem:[#allocation8 + $0x200] sm:$0xf]  ;;  %v2153_v23 = vld [vmem:[#allocation8 + $0x2f0] sm:$0xf0] }
 0x15a   :  { %1351 = vmatpush.bf16.msrb.mxu2 %v2136_v38  ;;  %v1815_v38 = vld [vmem:[#allocation8 + $0x40] sm:$0xf]  ;;  %v2391_v5 = vld [vmem:[#allocation8 + $0x20c] sm:$0xf0] }
 0x15b   :  { %v459_v17 = vadd.f32 %v458_v16, %v441_v14  ;;  %v1976_v14 = vor.u32 %v2375_v15, %v1975_v12  ;;  %v2231_v16 = vld [vmem:[#allocation8 + $0x380] sm:$0xf]  ;;  %1315 = vmatpush.bf16.msrb.mxu0 %v1848_v13  ;;  %v1816_v43 = vor.u32 %v2335_v40, %v1815_v38  ;;  %v2040_v11 = vor.u32 %v2391_v5, %v2039_v4  ;;  %v2327_v12 = vld [vmem:[#allocation8 + $0xc] sm:$0xf0]  ;;  %v2413_v40 = vld [vmem:[#allocation8 + $0x2c4] sm:$0xf] }
 0x15c   :  { %v1911_v15 = vld [vmem:[#allocation8 + $0x100] sm:$0xf]  ;;  %v2359_v13 = vld [vmem:[#allocation8 + $0x10c] sm:$0xf0]  ;;  %v1865_v4 = vld [vmem:[#allocation8 + $0xb0] sm:$0xf0] }
 0x15d   :  { %460 = vadd.xlane.f32.xlu1 %v459_v17  ;;  %v2439_v17 = vld [vmem:[#allocation8 + $0x38c] sm:$0xf0]  ;;  %1334 = vmatpush.bf16.msrb.mxu1 %v1976_v14  ;;  %v2377_v5 = vld [vmem:[#allocation8 + $0x1a4] sm:$0xf] }
 0x15e   :  { %1352 = vmatpush.bf16.msrb.mxu2 %v2120_v54  ;;  %v2232_v18 = vor.u32 %v2439_v17, %v2231_v16  ;;  %v1799_v54 = vld [vmem:[#allocation8 + $0x20] sm:$0xf]  ;;  %v1912_v17 = vor.u32 %v2359_v13, %v1911_v15  ;;  %v2441_v15 = vld [vmem:[#allocation8 + $0x3a4] sm:$0xf]  ;;  %v2249_v13 = vld [vmem:[#allocation8 + $0x3b0] sm:$0xf0] }
 0x15f   :  { %1316 = vmatpush.bf16.msrb.mxu0 %v1832_v26  ;;  %v1800_v63 = vor.u32 %v2331_v56, %v1799_v54  ;;  %v2445_v54 = vld [vmem:[#allocation8 + $0x3c4] sm:$0xf] }
 0x160   :  { %1372 = vmatpush.bf16.msrb.mxu3 %v2232_v18  ;;  %v2167_v18 = vld [vmem:[#allocation8 + $0x300] sm:$0xf] }
 0x161   :  { %1335 = vmatpush.bf16.msrb.mxu1 %v1960_v27  ;;  %v2168_v21 = vor.u32 %v2423_v19, %v2167_v18  ;;  %v1897_v27 = vld [vmem:[#allocation8 + $0xf0] sm:$0xf0]  ;;  %v2405_v18 = vld [vmem:[#allocation8 + $0x284] sm:$0xf] }
 0x162   :  { %1353 = vmatpush.bf16.msrb.mxu2 %v2104_v8  ;;  %v1783_v8 = vld [vmem:[#allocation8] sm:$0xf]  ;;  %v1900_v30 = vor.u32 %v2353_v24, %v1897_v27  ;;  %v2105_v19 = vld [vmem:[#allocation8 + $0x290] sm:$0xf0] }
 0x163   :  { %1317 = vmatpush.bf16.msrb.mxu0 %v1816_v43  ;;  %v1784_v16 = vor.u32 %v2327_v12, %v1783_v8  ;;  %v2140_v43 = vor.u32 %v2413_v40, %v2137_v41  ;;  %v1993_v12 = vld [vmem:[#allocation8 + $0x1b0] sm:$0xf0]  ;;  %v2401_v40 = vld [vmem:[#allocation8 + $0x264] sm:$0xf] }
 0x164   :  { %1373 = vmatpush.bf16.msrb.mxu3 %v2216_v31  ;;  %v2025_v31 = vld [vmem:[#allocation8 + $0x1f0] sm:$0xf0] }
 0x165   :  { %1336 = vmatpush.bf16.msrb.mxu1 %v1944_v46  ;;  %v2028_v38 = vor.u32 %v2385_v28, %v2025_v31  ;;  %v1881_v46 = vld [vmem:[#allocation8 + $0xd0] sm:$0xf0]  ;;  %v2437_v31 = vld [vmem:[#allocation8 + $0x384] sm:$0xf] }
 0x166   :  { %1354 = vmatpush.bf16.msrb.mxu2 %v2088_v22  ;;  %v2417_v22 = vld [vmem:[#allocation8 + $0x2e4] sm:$0xf]  ;;  %v1884_v52 = vor.u32 %v2349_v42, %v1881_v46  ;;  %v1977_v24 = vld [vmem:[#allocation8 + $0x190] sm:$0xf0] }
 0x167   :  { %1318 = vmatpush.bf16.msrb.mxu0 %v1800_v63  ;;  %v2156_v26 = vor.u32 %v2417_v22, %v2153_v23  ;;  %v2121_v63 = vld [vmem:[#allocation8 + $0x2b0] sm:$0xf0]  ;;  %v2373_v23 = vld [vmem:[#allocation8 + $0x184] sm:$0xf] }
 0x168   :  { %1374 = vmatpush.bf16.msrb.mxu3 %v2200_v51  ;;  %v1849_v22 = vld [vmem:[#allocation8 + $0x90] sm:$0xf0] }
 0x169   :  { %1337 = vmatpush.bf16.msrb.mxu1 %v1928_v0  ;;  %v2345_v0 = vld [vmem:[#allocation8 + $0xa4] sm:$0xf]  ;;  %v2089_v41 = vld [vmem:[#allocation8 + $0x270] sm:$0xf0] }
 0x16a   :  { %1355 = vmatpush.bf16.msrb.mxu2 %v2072_v39  ;;  %v2284_v39 = vor.u32 %v2449_v36, %v2281_v37  ;;  %v2233_v36 = vld [vmem:[#allocation8 + $0x390] sm:$0xf0]  ;;  %v2092_v46 = vor.u32 %v2401_v40, %v2089_v41 }
 0x16b   :  { %1319 = vmatpush.bf16.msrb.mxu0 %v1784_v16  ;;  %v2252_v16 = vor.u32 %v2441_v15, %v2249_v13  ;;  %v2429_v15 = vld [vmem:[#allocation8 + $0x344] sm:$0xf]  ;;  %v2185_v40 = vld [vmem:[#allocation8 + $0x330] sm:$0xf0] }
 0x16c   :  { %1375 = vmatpush.bf16.msrb.mxu3 %v2184_v3  ;;  %v2124_v3 = vor.u32 %v2409_v62, %v2121_v63  ;;  %v2217_v62 = vld [vmem:[#allocation8 + $0x370] sm:$0xf0]  ;;  %v2397_v63 = vld [vmem:[#allocation8 + $0x244] sm:$0xf] }
 0x16d   :  { %1338 = vmatpush.bf16.msrb.mxu1 %v1912_v17 }
 0x16e   :  { %1356 = vmatpush.bf16.msrb.mxu2 %v2056_v55  ;;  %v2265_v55 = vld [vmem:[#allocation8 + $0x3d0] sm:$0xf0] }
 0x16f   :  { %1388 = vmatpush.bf16.msra.mxu0 %v1900_v30  ;;  %v2268_v59 = vor.u32 %v2445_v54, %v2265_v55  ;;  %v1980_v30 = vor.u32 %v2373_v23, %v1977_v24  ;;  %v2369_v54 = vld [vmem:[#allocation8 + $0x164] sm:$0xf]  ;;  %v1961_v55 = vld [vmem:[#allocation8 + $0x170] sm:$0xf0] }
 0x170   :  { %1376 = vmatpush.bf16.msrb.mxu3 %v2168_v21  ;;  %v2108_v21 = vor.u32 %v2405_v18, %v2105_v19  ;;  %v2201_v19 = vld [vmem:[#allocation8 + $0x350] sm:$0xf0]  ;;  %v2329_v24 = vld [vmem:[#allocation8 + $0x24] sm:$0xf] }
 0x171   :  { %1407 = vmatpush.bf16.msra.mxu1 %v2028_v38  ;;  %v2236_v38 = vor.u32 %v2437_v31, %v2233_v36  ;;  %v2057_v23 = vld [vmem:[#allocation8 + $0x230] sm:$0xf0] }
 0x172   :  { %1357 = vmatpush.bf16.msrb.mxu2 %v2040_v11  ;;  %v1868_v11 = vor.u32 %v2345_v0, %v1865_v4  ;;  %v2333_v4 = vld [vmem:[#allocation8 + $0x44] sm:$0xf]  ;;  %v1929_v31 = vld [vmem:[#allocation8 + $0x130] sm:$0xf0] }
 0x173   :  { %1389 = vmatpush.bf16.msra.mxu0 %v1884_v52 }
 0x174   :  { %1445 = vmatpush.bf16.msra.mxu3 %v2284_v39 }
 0x175   :  { %1408 = vmatpush.bf16.msra.mxu1 %v2012_v53  ;;  %v1836_v53 = vor.u32 %v2337_v49, %v1833_v50 }
 0x176   :  { %1426 = vmatpush.bf16.msra.mxu2 %v2156_v26 }
 0x177   :  { %1390 = vmatpush.bf16.msra.mxu0 %v1868_v11  ;;  %v2365_v11 = vld [vmem:[#allocation8 + $0x144] sm:$0xf] }
 0x178   :  { %1446 = vmatpush.bf16.msra.mxu3 %v2268_v59  ;;  %v1964_v59 = vor.u32 %v2369_v54, %v1961_v55 }
 0x17a   :  { %1427 = vmatpush.bf16.msra.mxu2 %v2140_v43 }
 0x17c   :  { %1447 = vmatpush.bf16.msra.mxu3 %v2252_v16 }
 0x17e   :  { %1428 = vmatpush.bf16.msra.mxu2 %v2124_v3  ;;  %v2073_v3 = vld [vmem:[#allocation8 + $0x250] sm:$0xf0] }
 0x17f   :  { %v2076_v16 = vor.u32 %v2397_v63, %v2073_v3 }
 0x180   :  { %1448 = vmatpush.bf16.msra.mxu3 %v2236_v38 }
 0x182   :  { %1429 = vmatpush.bf16.msra.mxu2 %v2108_v21 }
 0x186   :  { %1430 = vmatpush.bf16.msra.mxu2 %v2092_v46 }
 0x18a   :  { %1431 = vmatpush.bf16.msra.mxu2 %v2076_v16  ;;  %v1903_v16 = vld [vmem:[#allocation8 + $0xe8] sm:$0xf] }
 0x1b8   :  { %v446_v14 = vpop.xlane.xlu2 %445 }
 0x1b9   :  { %v462_v20 = vmul.f32 %v446_v14, %v2692_v29  ;;  %v1996_v14 = vor.u32 %v2377_v5, %v1993_v12  ;;  %v1817_v5 = vld [vmem:[#allocation8 + $0x50] sm:$0xf0] }
 0x1ba   :  { %v1945_v12 = vld [vmem:[#allocation8 + $0x150] sm:$0xf0] }
 0x1bb   :  { %v2765_v25 = vadd.f32 1e-05, %v462_v20  ;;  %v2341_v20 = vld [vmem:[#allocation8 + $0x84] sm:$0xf]  ;;  %1409 = vmatpush.bf16.msra.mxu1 %v1996_v14  ;;  %v1948_v18 = vor.u32 %v2365_v11, %v1945_v12 }
 0x1bc   :  { %v1852_v28 = vor.u32 %v2341_v20, %v1849_v22  ;;  %v2393_v20 = vld [vmem:[#allocation8 + $0x224] sm:$0xf]  ;;  %v2204_v22 = vor.u32 %v2429_v15, %v2201_v19 }
 0x1bd   :  { %2468 = vrsqrt.f32 %v2765_v25  ;;  %vm476_vm2 = vweird.f32 %v2765_v25 }
 0x1be   :  { %1391 = vmatpush.bf16.msra.mxu0 %v1852_v28 }
 0x1bf   :  { %1410 = vmatpush.bf16.msra.mxu1 %v1980_v30  ;;  %v2361_v30 = vld [vmem:[#allocation8 + $0x124] sm:$0xf] }
 0x1c0   :  { %v451_v51 = vpop.xlane.xlu2 %450  ;;  %v1932_v38 = vor.u32 %v2361_v30, %v1929_v31 }
 0x1c1   :  { %v463_v56 = vmul.f32 %v451_v51, %v2692_v29 }
 0x1c2   :  { %1392 = vmatpush.bf16.msra.mxu0 %v1836_v53  ;;  %v2325_v53 = vld [vmem:[#allocation8 + $0x4] sm:$0xf] }
 0x1c3   :  { %v2769_v1 = vpop.eup %2468  ;;  %v2771_v2 = vadd.f32 1e-05, %v463_v56  ;;  %v2433_v56 = vld [vmem:[#allocation8 + $0x364] sm:$0xf]  ;;  %1411 = vmatpush.bf16.msra.mxu1 %v1964_v59 }
 0x1c4   :  { %v471_v8 = vmul.f32 %v2769_v1, %v2765_v25  ;;  %vm477_vm1 = vweird.f32 %v2769_v1  ;;  %v2220_v25 = vor.u32 %v2433_v56, %v2217_v62  ;;  %v1785_v56 = vld [vmem:[#allocation8 + $0x10] sm:$0xf0]  ;;  %v2357_v59 = vld [vmem:[#allocation8 + $0x104] sm:$0xf] }
 0x1c5   :  { %2470 = vrsqrt.f32 %v2771_v2  ;;  %vm478_vm3 = vmor %vm476_vm2, %vm477_vm1  ;;  %vm486_vm5 = vweird.f32 %v2771_v2  ;;  %v1788_v63 = vor.u32 %v2325_v53, %v1785_v56  ;;  %v2127_v53 = vld [vmem:[#allocation8 + $0x2a8] sm:$0xf] }
 0x1c6   :  { %v472_v17 = vmul.f32 %v2769_v1, %v471_v8  ;;  %1449 = vmatpush.bf16.msra.mxu3 %v2220_v25  ;;  %v2421_v25 = vld [vmem:[#allocation8 + $0x304] sm:$0xf] }
 0x1c7   :  { %1412 = vmatpush.bf16.msra.mxu1 %v1948_v18  ;;  %v2031_v18 = vld [vmem:[#allocation8 + $0x1e8] sm:$0xf] }
 0x1c8   :  { %v473_v26 = vmul.f32 0.5, %v472_v17  ;;  %v456_v27 = vpop.xlane.xlu0 %455  ;;  %v1820_v17 = vor.u32 %v2333_v4, %v1817_v5 }
 0x1c9   :  { %v464_v37 = vmul.f32 %v456_v27, %v2692_v29 }
 0x1ca   :  { %v474_v39 = vsub.f32 1.5, %v473_v26  ;;  %v1801_v26 = vld [vmem:[#allocation8 + $0x30] sm:$0xf0]  ;;  %1393 = vmatpush.bf16.msra.mxu0 %v1820_v17  ;;  %1450 = vmatpush.bf16.msra.mxu3 %v2204_v22  ;;  %v2356_v17 = vld [vmem:[#allocation8 + $0xf4] sm:$0xf0] }
 0x1cb   :  { %v2779_v42 = vpop.eup %2470  ;;  %v2781_v43 = vadd.f32 1e-05, %v464_v37  ;;  %v1804_v28 = vor.u32 %v2329_v24, %v1801_v26  ;;  %1413 = vmatpush.bf16.msra.mxu1 %v1932_v38  ;;  %v2287_v22 = vld [vmem:[#allocation8 + $0x3e8] sm:$0xf]  ;;  %v2352_v38 = vld [vmem:[#allocation8 + $0xd4] sm:$0xf0] }
 0x1cc   :  { %v475_v51 = vmul.f32 %v2769_v1, %v474_v39  ;;  %v481_v52 = vmul.f32 %v2779_v42, %v2771_v2  ;;  %vm487_vm4 = vweird.f32 %v2779_v42  ;;  %v2425_v39 = vld [vmem:[#allocation8 + $0x324] sm:$0xf]  ;;  %v2169_v2 = vld [vmem:[#allocation8 + $0x310] sm:$0xf0] }
 0x1cd   :  { %2472 = vrsqrt.f32 %v2781_v43  ;;  %v2188_v50 = vor.u32 %v2425_v39, %v2185_v40  ;;  %vm488_vm6 = vmor %vm486_vm5, %vm487_vm4  ;;  %v2015_v39 = vld [vmem:[#allocation8 + $0x1c8] sm:$0xf]  ;;  %vm496_vm8 = vweird.f32 %v2781_v43  ;;  %v2384_v40 = vld [vmem:[#allocation8 + $0x1d4] sm:$0xf0] }
 0x1ce   :  { %v482_v0 = vmul.f32 %v2779_v42, %v481_v52  ;;  %v479_v8 = vsel %vm478_vm3, %v2769_v1, %v475_v51  ;;  %v2060_v1 = vor.u32 %v2393_v20, %v2057_v23  ;;  %v2389_v51 = vld [vmem:[#allocation8 + $0x204] sm:$0xf]  ;;  %v2041_v52 = vld [vmem:[#allocation8 + $0x210] sm:$0xf0]  ;;  %1394 = vmatpush.bf16.msra.mxu0 %v1804_v28  ;;  %v1904_v20 = vor.u32 %v2356_v17, %v1903_v16  ;;  %v2452_v23 = vld [vmem:[#allocation8 + $0x3f4] sm:$0xf0] }
 0x1cf   :  { %v511_v49 = vmul.f32 %v479_v8, %v2697_v33  ;;  %v513_v54 = vmul.f32 %v479_v8, %v2701_v35  ;;  %v2044_v55 = vor.u32 %v2389_v51, %v2041_v52  ;;  %1451 = vmatpush.bf16.msra.mxu3 %v2188_v50  ;;  %v2288_v26 = vor.u32 %v2452_v23, %v2287_v22  ;;  %v2239_v16 = vld [vmem:[#allocation8 + $0x388] sm:$0xf]  ;;  %v2440_v17 = vld [vmem:[#allocation8 + $0x394] sm:$0xf0] }
 0x1d0   :  { %v483_v13 = vmul.f32 0.5, %v482_v0  ;;  %v461_v14 = vpop.xlane.xlu1 %460  ;;  %1432 = vmatpush.bf16.msra.mxu2 %v2060_v1  ;;  %v1913_v0 = vld [vmem:[#allocation8 + $0x110] sm:$0xf0]  ;;  %v2416_v1 = vld [vmem:[#allocation8 + $0x2d4] sm:$0xf0]  ;;  %v2016_v51 = vor.u32 %v2384_v40, %v2015_v39  ;;  %v2240_v22 = vor.u32 %v2440_v17, %v2239_v16 }
 0x1d1   :  { %v465_v21 = vmul.f32 %v461_v14, %v2692_v29  ;;  %v510_v29 = vmul.f32 %v479_v8, %v2695_v32  ;;  %v512_v32 = vmul.f32 %v479_v8, %v2699_v34  ;;  %v2172_v8 = vor.u32 %v2421_v25, %v2169_v2  ;;  %v2255_v25 = vld [vmem:[#allocation8 + $0x3a8] sm:$0xf]  ;;  %v2444_v2 = vld [vmem:[#allocation8 + $0x3b4] sm:$0xf0] }
 0x1d2   :  { %v484_v27 = vsub.f32 1.5, %v483_v13  ;;  %1395 = vmatpush.bf16.msra.mxu0 %v1788_v63  ;;  %v2424_v16 = vld [vmem:[#allocation8 + $0x314] sm:$0xf0] }
 0x1d3   :  { %v2794_v36 = vpop.eup %2472  ;;  %v2797_v37 = vadd.f32 1e-05, %v465_v21  ;;  %v2388_v21 = vld [vmem:[#allocation8 + $0x1f4] sm:$0xf0]  ;;  %1452 = vmatpush.bf16.msra.mxu3 %v2172_v8 }
 0x1d4   :  { %v485_v41 = vmul.f32 %v2779_v42, %v484_v27  ;;  %v491_v46 = vmul.f32 %v2794_v36, %v2781_v43  ;;  %1433 = vmatpush.bf16.msra.mxu2 %v2044_v55  ;;  %vm497_vm7 = vweird.f32 %v2794_v36  ;;  %v2032_v24 = vor.u32 %v2388_v21, %v2031_v18  ;;  %v2143_v27 = vld [vmem:[#allocation8 + $0x2c8] sm:$0xf]  ;;  %v2348_v43 = vld [vmem:[#allocation8 + $0xb4] sm:$0xf0] }
 0x1d5   :  { %2474 = vrsqrt.f32 %v2797_v37  ;;  %v2144_v31 = vor.u32 %v2416_v1, %v2143_v27  ;;  %vm498_vm10 = vmor %vm496_vm8, %vm497_vm7  ;;  %vm506_vm11 = vweird.f32 %v2797_v37  ;;  %v1999_v55 = vld [vmem:[#allocation8 + $0x1a8] sm:$0xf] }
 0x1d6   :  { %v489_v33 = vsel %vm488_vm6, %v2779_v42, %v485_v41  ;;  %v492_v62 = vmul.f32 %v2794_v36, %v491_v46  ;;  %v1916_v42 = vor.u32 %v2357_v59, %v1913_v0  ;;  %v2271_v41 = vld [vmem:[#allocation8 + $0x3c8] sm:$0xf]  ;;  %v2448_v46 = vld [vmem:[#allocation8 + $0x3d4] sm:$0xf0] }
 0x1d7   :  { %v514_v3 = vmul.f32 %v489_v33, %v2712_v44  ;;  %v515_v4 = vmul.f32 %v489_v33, %v2714_v45  ;;  %v516_v34 = vmul.f32 %v489_v33, %v2716_v47  ;;  %v517_v35 = vmul.f32 %v489_v33, %v2718_v48  ;;  %v2159_v45 = vld [vmem:[#allocation8 + $0x2e8] sm:$0xf]  ;;  %v2420_v47 = vld [vmem:[#allocation8 + $0x2f4] sm:$0xf0] }
 0x1d8   :  { %v493_v5 = vmul.f32 0.5, %v492_v62  ;;  %v2160_v48 = vor.u32 %v2420_v47, %v2159_v45  ;;  %1414 = vmatpush.bf16.msra.mxu1 %v1916_v42  ;;  %v2272_v52 = vor.u32 %v2448_v46, %v2271_v41  ;;  %v2380_v0 = vld [vmem:[#allocation8 + $0x1b4] sm:$0xf0]  ;;  %v1983_v42 = vld [vmem:[#allocation8 + $0x188] sm:$0xf] }
 0x1d9   :  { %v2817_v11 = vpack.c.bf16 %v514_v3, %v510_v29  ;;  %v2819_v12 = vpack.c.bf16 %v515_v4, %v511_v49  ;;  %v2821_v15 = vpack.c.bf16 %v516_v34, %v512_v32  ;;  %v2823_v13 = vpack.c.bf16 %v517_v35, %v513_v54  ;;  %v1887_v29 = vld [vmem:[#allocation8 + $0xc8] sm:$0xf]  ;;  %v2412_v32 = vld [vmem:[#allocation8 + $0x2b4] sm:$0xf0] }
 0x1da   :  { %v494_v44 = vsub.f32 1.5, %v493_v5  ;;  %v1888_v50 = vor.u32 %v2352_v38, %v1887_v29  ;;  %v1871_v54 = vld [vmem:[#allocation8 + $0xa8] sm:$0xf]  ;;  %v2128_v62 = vor.u32 %v2412_v32, %v2127_v53  ;;  %v2408_v4 = vld [vmem:[#allocation8 + $0x294] sm:$0xf0]  ;;  %v2256_v34 = vor.u32 %v2444_v2, %v2255_v25 }
 0x1db   :  { %v2825_v14 = vpop.eup %2474  ;;  %1320 = vmatmul.bf16.vlgmr.msrb.gmra.mxu0 %v2817_v11  ;;  %1339 = vmatmul.bf16.vlgmr.msrb.gmra.mxu1 %v2819_v12  ;;  %v1872_v63 = vor.u32 %v2348_v43, %v1871_v54  ;;  %v2111_v3 = vld [vmem:[#allocation8 + $0x288] sm:$0xf]  ;;  %v2344_v5 = vld [vmem:[#allocation8 + $0x94] sm:$0xf0] }
 0x1dc   :  { %v501_v19 = vmul.f32 %v2825_v14, %v2797_v37  ;;  %1358 = vmatmul.bf16.vlgmr.msrb.gmra.mxu2 %v2821_v15  ;;  %1377 = vmatmul.bf16.vlgmr.msrb.gmra.mxu3 %v2823_v13  ;;  %v495_v28 = vmul.f32 %v2794_v36, %v494_v44  ;;  %vm507_vm9 = vweird.f32 %v2825_v14  ;;  %v2000_v37 = vor.u32 %v2380_v0, %v1999_v55  ;;  %v1855_v35 = vld [vmem:[#allocation8 + $0x88] sm:$0xf]  ;;  %v2436_v29 = vld [vmem:[#allocation8 + $0x374] sm:$0xf0] }
 0x1dd   :  { %1502 = vmatpush.bf16.msrb.mxu2 %v2160_v48  ;;  %1464 = vmatpush.bf16.msrb.mxu0 %v1904_v20  ;;  %vm2844_vm12 = vmor %vm506_vm11, %vm507_vm9  ;;  %v2376_v48 = vld [vmem:[#allocation8 + $0x194] sm:$0xf0]  ;;  %v1856_v20 = vor.u32 %v2344_v5, %v1855_v35  ;;  %v1839_v27 = vld [vmem:[#allocation8 + $0x68] sm:$0xf] }
 0x1de   :  { %v502_v30 = vmul.f32 %v2825_v14, %v501_v19  ;;  %1483 = vmatpush.bf16.msrb.mxu1 %v2032_v24  ;;  %1521 = vmatpush.bf16.msrb.mxu3 %v2288_v26  ;;  %v499_v56 = vsel %vm498_vm10, %v2794_v36, %v495_v28  ;;  %v2112_v19 = vor.u32 %v2408_v4, %v2111_v3  ;;  %v1967_v1 = vld [vmem:[#allocation8 + $0x168] sm:$0xf]  ;;  %v2372_v28 = vld [vmem:[#allocation8 + $0x174] sm:$0xf0] }
 0x1df   :  { %v518_v8 = vmul.f32 %v499_v56, %v2729_v57  ;;  %v519_v44 = vmul.f32 %v499_v56, %v2731_v58  ;;  %v520_v45 = vmul.f32 %v499_v56, %v2733_v60  ;;  %v521_v47 = vmul.f32 %v499_v56, %v2735_v61  ;;  %v2079_v38 = vld [vmem:[#allocation8 + $0x248] sm:$0xf]  ;;  %v2400_v41 = vld [vmem:[#allocation8 + $0x254] sm:$0xf0] }
 0x1e0   :  { %v503_v49 = vmul.f32 0.5, %v502_v30  ;;  %v1984_v61 = vor.u32 %v2376_v48, %v1983_v42  ;;  %v1968_v39 = vor.u32 %v2372_v28, %v1967_v1  ;;  %v1823_v46 = vld [vmem:[#allocation8 + $0x48] sm:$0xf]  ;;  %v2368_v53 = vld [vmem:[#allocation8 + $0x154] sm:$0xf0] }
 0x1e1   :  { %1503 = vmatpush.bf16.msrb.mxu2 %v2144_v31  ;;  %1465 = vmatpush.bf16.msrb.mxu0 %v1888_v50  ;;  %v2223_v31 = vld [vmem:[#allocation8 + $0x368] sm:$0xf]  ;;  %v2080_v50 = vor.u32 %v2400_v41, %v2079_v38  ;;  %v2432_v54 = vld [vmem:[#allocation8 + $0x354] sm:$0xf0]  ;;  %v2145_v1 = vld [vmem:[#allocation8 + $0x2d8] sm:$0xf0] }
 0x1e2   :  { %v504_v59 = vsub.f32 1.5, %v503_v49  ;;  %1484 = vmatpush.bf16.msrb.mxu1 %v2016_v51  ;;  %1522 = vmatpush.bf16.msrb.mxu3 %v2272_v52  ;;  %v2224_v40 = vor.u32 %v2436_v29, %v2223_v31  ;;  %v2336_v49 = vld [vmem:[#allocation8 + $0x54] sm:$0xf0]  ;;  %v1951_v52 = vld [vmem:[#allocation8 + $0x148] sm:$0xf] }
 0x1e3   :  { %v1824_v51 = vor.u32 %v2336_v49, %v1823_v46  ;;  %v2207_v32 = vld [vmem:[#allocation8 + $0x348] sm:$0xf]  ;;  %v2396_v55 = vld [vmem:[#allocation8 + $0x234] sm:$0xf0]  ;;  %v1952_v33 = vor.u32 %v2368_v53, %v1951_v52  ;;  %v2350_v28 = vld [vmem:[#allocation8 + $0xcc] sm:$0xf] }
 0x1e4   :  { %v505_v36 = vmul.f32 %v2825_v14, %v504_v59  ;;  %v2063_v43 = vld [vmem:[#allocation8 + $0x228] sm:$0xf]  ;;  %v2332_v59 = vld [vmem:[#allocation8 + $0x34] sm:$0xf0]  ;;  %v2382_v38 = vld [vmem:[#allocation8 + $0x1cc] sm:$0xf] }
 0x1e5   :  { %1504 = vmatpush.bf16.msrb.mxu2 %v2128_v62  ;;  %1466 = vmatpush.bf16.msrb.mxu0 %v1872_v63  ;;  %v1807_v56 = vld [vmem:[#allocation8 + $0x28] sm:$0xf]  ;;  %v2208_v62 = vor.u32 %v2432_v54, %v2207_v32  ;;  %v2364_v0 = vld [vmem:[#allocation8 + $0x134] sm:$0xf0]  ;;  %v2064_v25 = vor.u32 %v2396_v55, %v2063_v43  ;;  %v2273_v46 = vld [vmem:[#allocation8 + $0x3d8] sm:$0xf0] }
 0x1e6   :  { %v509_v18 = vsel %vm2844_vm12, %v2825_v14, %v505_v36  ;;  %1485 = vmatpush.bf16.msrb.mxu1 %v2000_v37  ;;  %1523 = vmatpush.bf16.msrb.mxu3 %v2256_v34  ;;  %v1935_v63 = vld [vmem:[#allocation8 + $0x128] sm:$0xf]  ;;  %v1808_v37 = vor.u32 %v2332_v59, %v1807_v56  ;;  %v2428_v3 = vld [vmem:[#allocation8 + $0x334] sm:$0xf0]  ;;  %v2410_v49 = vld [vmem:[#allocation8 + $0x2ac] sm:$0xf] }
 0x1e7   :  { %v522_v21 = vmul.f32 %v509_v18, %v2747_v6  ;;  %v523_v57 = vmul.f32 %v509_v18, %v2750_v7  ;;  %v524_v58 = vmul.f32 %v509_v18, %v2752_v9  ;;  %v525_v60 = vmul.f32 %v509_v18, %v2754_v10  ;;  %v2095_v6 = vld [vmem:[#allocation8 + $0x268] sm:$0xf]  ;;  %v2404_v7 = vld [vmem:[#allocation8 + $0x274] sm:$0xf0]  ;;  %v2346_v52 = vld [vmem:[#allocation8 + $0xac] sm:$0xf] }
 0x1e8   :  { %v2096_v9 = vor.u32 %v2404_v7, %v2095_v6  ;;  %v2340_v10 = vld [vmem:[#allocation8 + $0x74] sm:$0xf0]  ;;  %v2191_v2 = vld [vmem:[#allocation8 + $0x328] sm:$0xf]  ;;  %v1936_v5 = vor.u32 %v2364_v0, %v1935_v63  ;;  %v2450_v7 = vld [vmem:[#allocation8 + $0x3ec] sm:$0xf] }
 0x1e9   :  { %v2860_v23 = vpack.c.bf16 %v522_v21, %v518_v8  ;;  %v2862_v24 = vpack.c.bf16 %v523_v57, %v519_v44  ;;  %v2864_v14 = vpack.c.bf16 %v524_v58, %v520_v45  ;;  %v2866_v26 = vpack.c.bf16 %v525_v60, %v521_v47  ;;  %1505 = vmatpush.bf16.msrb.mxu2 %v2112_v19  ;;  %v2047_v4 = vld [vmem:[#allocation8 + $0x208] sm:$0xf]  ;;  %v2392_v36 = vld [vmem:[#allocation8 + $0x214] sm:$0xf0]  ;;  %v2418_v19 = vld [vmem:[#allocation8 + $0x2ec] sm:$0xf] }
 0x1ea   :  { %1467 = vmatpush.bf16.msrb.mxu0 %v1856_v20  ;;  %v1840_v30 = vor.u32 %v2340_v10, %v1839_v27  ;;  %1486 = vmatpush.bf16.msrb.mxu1 %v1984_v61  ;;  %v1791_v34 = vld [vmem:[#allocation8 + $0x8] sm:$0xf]  ;;  %v2328_v35 = vld [vmem:[#allocation8 + $0x14] sm:$0xf0]  ;;  %v2192_v42 = vor.u32 %v2428_v3, %v2191_v2  ;;  %v2048_v44 = vor.u32 %v2392_v36, %v2047_v4  ;;  %v2161_v20 = vld [vmem:[#allocation8 + $0x2f8] sm:$0xf0] }
 0x1eb   :  { %1325 = vmatmul.bf16.gmra.mxu0 %v2860_v23  ;;  %1344 = vmatmul.bf16.gmra.mxu1 %v2862_v24  ;;  %v1919_v8 = vld [vmem:[#allocation8 + $0x108] sm:$0xf]  ;;  %v1792_v45 = vor.u32 %v2328_v35, %v1791_v34  ;;  %v2360_v47 = vld [vmem:[#allocation8 + $0x114] sm:$0xf0]  ;;  %v2354_v21 = vld [vmem:[#allocation8 + $0xec] sm:$0xf]  ;;  %v2164_v57 = vor.u32 %v2418_v19, %v2161_v20 }
 0x1ec   :  { %1363 = vmatmul.bf16.gmra.mxu2 %v2864_v14  ;;  %1382 = vmatmul.bf16.gmra.mxu3 %v2866_v26  ;;  %v2175_v48 = vld [vmem:[#allocation8 + $0x308] sm:$0xf]  ;;  %v1920_v17 = vor.u32 %v2360_v47, %v1919_v8  ;;  %v1905_v58 = vld [vmem:[#allocation8 + $0xf8] sm:$0xf0]  ;;  %v2386_v60 = vld [vmem:[#allocation8 + $0x1ec] sm:$0xf] }
 0x1ed   :  { %1524 = vmatpush.bf16.msrb.mxu3 %v2240_v22  ;;  %1506 = vmatpush.bf16.msrb.mxu2 %v2096_v9  ;;  %v2176_v18 = vor.u32 %v2424_v16, %v2175_v48  ;;  %v2033_v61 = vld [vmem:[#allocation8 + $0x1f8] sm:$0xf0]  ;;  %v1908_v22 = vor.u32 %v2354_v21, %v1905_v58  ;;  %v2414_v9 = vld [vmem:[#allocation8 + $0x2cc] sm:$0xf] }
 0x1ee   :  { %1468 = vmatpush.bf16.msrb.mxu0 %v1840_v30  ;;  %1487 = vmatpush.bf16.msrb.mxu1 %v1968_v39  ;;  %v2036_v6 = vor.u32 %v2386_v60, %v2033_v61  ;;  %v2289_v27 = vld [vmem:[#allocation8 + $0x3f8] sm:$0xf0]  ;;  %v2148_v31 = vor.u32 %v2414_v9, %v2145_v1  ;;  %v2378_v32 = vld [vmem:[#allocation8 + $0x1ac] sm:$0xf] }
 0x1ef   :  { %v2292_v10 = vor.u32 %v2450_v7, %v2289_v27  ;;  %v1889_v30 = vld [vmem:[#allocation8 + $0xd8] sm:$0xf0]  ;;  %v2442_v43 = vld [vmem:[#allocation8 + $0x3ac] sm:$0xf] }
 0x1f0   :  { %v1892_v29 = vor.u32 %v2350_v28, %v1889_v30  ;;  %v2017_v39 = vld [vmem:[#allocation8 + $0x1d8] sm:$0xf0]  ;;  %v2374_v2 = vld [vmem:[#allocation8 + $0x18c] sm:$0xf] }
 0x1f1   :  { %1525 = vmatpush.bf16.msrb.mxu3 %v2224_v40  ;;  %1507 = vmatpush.bf16.msrb.mxu2 %v2080_v50  ;;  %v2446_v40 = vld [vmem:[#allocation8 + $0x3cc] sm:$0xf]  ;;  %v2020_v41 = vor.u32 %v2382_v38, %v2017_v39  ;;  %v2129_v50 = vld [vmem:[#allocation8 + $0x2b8] sm:$0xf0] }
 0x1f2   :  { %1469 = vmatpush.bf16.msrb.mxu0 %v1824_v51  ;;  %1488 = vmatpush.bf16.msrb.mxu1 %v1952_v33  ;;  %v2276_v51 = vor.u32 %v2446_v40, %v2273_v46  ;;  %v1873_v53 = vld [vmem:[#allocation8 + $0xb8] sm:$0xf0]  ;;  %v2132_v56 = vor.u32 %v2410_v49, %v2129_v50  ;;  %v2406_v33 = vld [vmem:[#allocation8 + $0x28c] sm:$0xf] }
 0x1f3   :  { %v2001_v54 = vld [vmem:[#allocation8 + $0x1b8] sm:$0xf0]  ;;  %v1876_v59 = vor.u32 %v2346_v52, %v1873_v53  ;;  %v2438_v34 = vld [vmem:[#allocation8 + $0x38c] sm:$0xf] }
 0x1f4   :  { %v2257_v55 = vld [vmem:[#allocation8 + $0x3b8] sm:$0xf0]  ;;  %v2402_v8 = vld [vmem:[#allocation8 + $0x26c] sm:$0xf] }
 0x1f5   :  { %1526 = vmatpush.bf16.msrb.mxu3 %v2208_v62  ;;  %1508 = vmatpush.bf16.msrb.mxu2 %v2064_v25  ;;  %v2004_v62 = vor.u32 %v2378_v32, %v2001_v54  ;;  %v2260_v63 = vor.u32 %v2442_v43, %v2257_v55  ;;  %v2113_v0 = vld [vmem:[#allocation8 + $0x298] sm:$0xf0]  ;;  %v2342_v25 = vld [vmem:[#allocation8 + $0x8c] sm:$0xf] }
 0x1f6   :  { %1470 = vmatpush.bf16.msrb.mxu0 %v1808_v37  ;;  %1489 = vmatpush.bf16.msrb.mxu1 %v1936_v5  ;;  %v1857_v37 = vld [vmem:[#allocation8 + $0x98] sm:$0xf0]  ;;  %v2116_v3 = vor.u32 %v2406_v33, %v2113_v0  ;;  %v2370_v16 = vld [vmem:[#allocation8 + $0x16c] sm:$0xf] }
 0x1f7   :  { %v1860_v4 = vor.u32 %v2342_v25, %v1857_v37  ;;  %v1985_v36 = vld [vmem:[#allocation8 + $0x198] sm:$0xf0]  ;;  %v2434_v19 = vld [vmem:[#allocation8 + $0x36c] sm:$0xf] }
 0x1f8   :  { %v2241_v35 = vld [vmem:[#allocation8 + $0x398] sm:$0xf0]  ;;  %v1988_v5 = vor.u32 %v2374_v2, %v1985_v36  ;;  %v2398_v21 = vld [vmem:[#allocation8 + $0x24c] sm:$0xf]  ;;  %v2896_v2 = vld [vmem:[#allocation10] sm:$0xf] }
 0x1f9   :  { %1527 = vmatpush.bf16.msrb.mxu3 %v2192_v42  ;;  %1509 = vmatpush.bf16.msrb.mxu2 %v2048_v44  ;;  %v2244_v42 = vor.u32 %v2438_v34, %v2241_v35  ;;  %v2097_v44 = vld [vmem:[#allocation8 + $0x278] sm:$0xf0]  ;;  %v2334_v61 = vld [vmem:[#allocation8 + $0x4c] sm:$0xf] }
 0x1fa   :  { %1471 = vmatpush.bf16.msrb.mxu0 %v1792_v45  ;;  %1490 = vmatpush.bf16.msrb.mxu1 %v1920_v17  ;;  %v2338_v45 = vld [vmem:[#allocation8 + $0x6c] sm:$0xf]  ;;  %v2100_v47 = vor.u32 %v2402_v8, %v2097_v44  ;;  %v1841_v48 = vld [vmem:[#allocation8 + $0x78] sm:$0xf0] }
 0x1fb   :  { %1396 = vmatmul.bf16.vlgmr.msra.gmra.mxu0 %v2817_v11  ;;  %1415 = vmatmul.bf16.vlgmr.msra.gmra.mxu1 %v2819_v12  ;;  %v1969_v17 = vld [vmem:[#allocation8 + $0x178] sm:$0xf0]  ;;  %v2366_v27 = vld [vmem:[#allocation8 + $0x14c] sm:$0xf] }
 0x1fc   :  { %1434 = vmatmul.bf16.vlgmr.msra.gmra.mxu2 %v2821_v15  ;;  %1453 = vmatmul.bf16.vlgmr.msra.gmra.mxu3 %v2823_v13  ;;  %v2225_v20 = vld [vmem:[#allocation8 + $0x378] sm:$0xf0]  ;;  %v2394_v28 = vld [vmem:[#allocation8 + $0x22c] sm:$0xf] }
 0x1fd   :  { %1528 = vmatpush.bf16.msrb.mxu3 %v2176_v18  ;;  %1578 = vmatpush.bf16.msra.mxu2 %v2164_v57  ;;  %v1844_v18 = vor.u32 %v2338_v45, %v1841_v48  ;;  %v1972_v57 = vor.u32 %v2370_v16, %v1969_v17  ;;  %v2228_v58 = vor.u32 %v2434_v19, %v2225_v20  ;;  %v2081_v60 = vld [vmem:[#allocation8 + $0x258] sm:$0xf0]  ;;  %v2362_v40 = vld [vmem:[#allocation8 + $0x12c] sm:$0xf] }
 0x1fe   :  { %1540 = vmatpush.bf16.msra.mxu0 %v1908_v22  ;;  %1559 = vmatpush.bf16.msra.mxu1 %v2036_v6  ;;  %v1825_v22 = vld [vmem:[#allocation8 + $0x58] sm:$0xf0]  ;;  %v2084_v6 = vor.u32 %v2398_v21, %v2081_v60  ;;  %v2426_v50 = vld [vmem:[#allocation8 + $0x32c] sm:$0xf] }
 0x1ff   :  { %v1828_v7 = vor.u32 %v2334_v61, %v1825_v22  ;;  %v1953_v9 = vld [vmem:[#allocation8 + $0x158] sm:$0xf0]  ;;  %v2390_v52 = vld [vmem:[#allocation8 + $0x20c] sm:$0xf]  ;;  %v665_v61 = vperm.slane %v2896_v2, 1 }
 0x200   :  { %v2209_v1 = vld [vmem:[#allocation8 + $0x358] sm:$0xf0]  ;;  %v1956_v38 = vor.u32 %v2366_v27, %v1953_v9  ;;  %v2326_v32 = vld [vmem:[#allocation8 + $0xc] sm:$0xf] }
 0x201   :  { %1597 = vmatpush.bf16.msra.mxu3 %v2292_v10  ;;  %1579 = vmatpush.bf16.msra.mxu2 %v2148_v31  ;;  %v2430_v10 = vld [vmem:[#allocation8 + $0x34c] sm:$0xf]  ;;  %v2065_v30 = vld [vmem:[#allocation8 + $0x238] sm:$0xf0] }
 0x202   :  { %1541 = vmatpush.bf16.msra.mxu0 %v1892_v29  ;;  %1560 = vmatpush.bf16.msra.mxu1 %v2020_v41  ;;  %v2330_v31 = vld [vmem:[#allocation8 + $0x2c] sm:$0xf]  ;;  %v1809_v29 = vld [vmem:[#allocation8 + $0x38] sm:$0xf0]  ;;  %v2212_v39 = vor.u32 %v2430_v10, %v2209_v1  ;;  %v2068_v46 = vor.u32 %v2394_v28, %v2065_v30 }
 0x203   :  { %v1937_v41 = vld [vmem:[#allocation8 + $0x138] sm:$0xf0]  ;;  %v1812_v49 = vor.u32 %v2330_v31, %v1809_v29 }
 0x204   :  { %v2049_v53 = vld [vmem:[#allocation8 + $0x218] sm:$0xf0]  ;;  %v1940_v43 = vor.u32 %v2362_v40, %v1937_v41 }
 0x205   :  { %1598 = vmatpush.bf16.msra.mxu3 %v2276_v51  ;;  %1580 = vmatpush.bf16.msra.mxu2 %v2132_v56  ;;  %v2193_v51 = vld [vmem:[#allocation8 + $0x338] sm:$0xf0]  ;;  %v2358_v56 = vld [vmem:[#allocation8 + $0x10c] sm:$0xf] }
 0x206   :  { %1542 = vmatpush.bf16.msra.mxu0 %v1876_v59  ;;  %1561 = vmatpush.bf16.msra.mxu1 %v2004_v62  ;;  %v1793_v54 = vld [vmem:[#allocation8 + $0x18] sm:$0xf0]  ;;  %v2196_v55 = vor.u32 %v2426_v50, %v2193_v51  ;;  %v2052_v59 = vor.u32 %v2390_v52, %v2049_v53 }
 0x207   :  { %v1796_v33 = vor.u32 %v2326_v32, %v1793_v54  ;;  %v1921_v62 = vld [vmem:[#allocation8 + $0x118] sm:$0xf0] }
 0x208   :  { %v2177_v0 = vld [vmem:[#allocation8 + $0x318] sm:$0xf0]  ;;  %v1924_v25 = vor.u32 %v2358_v56, %v1921_v62 }
 0x209   :  { %1599 = vmatpush.bf16.msra.mxu3 %v2260_v63  ;;  %1581 = vmatpush.bf16.msra.mxu2 %v2116_v3  ;;  %v2422_v63 = vld [vmem:[#allocation8 + $0x30c] sm:$0xf]  ;;  %v664_v3 = vperm.slane %v2896_v2, 0 }
 0x20a   :  { %1543 = vmatpush.bf16.msra.mxu0 %v1860_v4  ;;  %1562 = vmatpush.bf16.msra.mxu1 %v1988_v5  ;;  %v2180_v37 = vor.u32 %v2422_v63, %v2177_v0 }
 0x20b   :  { %1401 = vmatmul.bf16.gmra.mxu0 %v2860_v23  ;;  %1420 = vmatmul.bf16.gmra.mxu1 %v2862_v24 }
 0x20c   :  { %1439 = vmatmul.bf16.gmra.mxu2 %v2864_v14  ;;  %1458 = vmatmul.bf16.gmra.mxu3 %v2866_v26 }
 0x20d   :  { %1600 = vmatpush.bf16.msra.mxu3 %v2244_v42  ;;  %1582 = vmatpush.bf16.msra.mxu2 %v2100_v47 }
 0x20e   :  { %1544 = vmatpush.bf16.msra.mxu0 %v1844_v18  ;;  %1563 = vmatpush.bf16.msra.mxu1 %v1972_v57 }
 0x211   :  { %1601 = vmatpush.bf16.msra.mxu3 %v2228_v58  ;;  %1583 = vmatpush.bf16.msra.mxu2 %v2084_v6 }
 0x212   :  { %1545 = vmatpush.bf16.msra.mxu0 %v1828_v7  ;;  %1564 = vmatpush.bf16.msra.mxu1 %v1956_v38 }
 0x215   :  { %1602 = vmatpush.bf16.msra.mxu3 %v2212_v39  ;;  %1584 = vmatpush.bf16.msra.mxu2 %v2068_v46 }
 0x216   :  { %1546 = vmatpush.bf16.msra.mxu0 %v1812_v49  ;;  %1565 = vmatpush.bf16.msra.mxu1 %v1940_v43 }
 0x219   :  { %1603 = vmatpush.bf16.msra.mxu3 %v2196_v55  ;;  %1585 = vmatpush.bf16.msra.mxu2 %v2052_v59 }
 0x21a   :  { %1547 = vmatpush.bf16.msra.mxu0 %v1796_v33  ;;  %1566 = vmatpush.bf16.msra.mxu1 %v1924_v25 }
 0x21b   :  { %1472 = vmatmul.bf16.vlgmr.msrb.gmra.mxu0 %v2817_v11  ;;  %1491 = vmatmul.bf16.vlgmr.msrb.gmra.mxu1 %v2819_v12 }
 0x21c   :  { %1510 = vmatmul.bf16.vlgmr.msrb.gmra.mxu2 %v2821_v15  ;;  %1529 = vmatmul.bf16.vlgmr.msrb.gmra.mxu3 %v2823_v13 }
 0x21d   :  { %1604 = vmatpush.bf16.msra.mxu3 %v2180_v37  ;;  %v666_v37 = vperm.slane %v2896_v2, 2 }
 0x22b   :  { %1477 = vmatmul.bf16.gmra.mxu0 %v2860_v23  ;;  %1496 = vmatmul.bf16.gmra.mxu1 %v2862_v24 }
 0x22c   :  { %1515 = vmatmul.bf16.gmra.mxu2 %v2864_v14  ;;  %1534 = vmatmul.bf16.gmra.mxu3 %v2866_v26 }
 0x23b   :  { %1548 = vmatmul.bf16.vlgmr.msra.gmra.mxu0 %v2817_v11  ;;  %1567 = vmatmul.bf16.vlgmr.msra.gmra.mxu1 %v2819_v12 }
 0x23c   :  { %1586 = vmatmul.bf16.vlgmr.msra.gmra.mxu2 %v2821_v15  ;;  %1605 = vmatmul.bf16.vlgmr.msra.gmra.mxu3 %v2823_v13 }
 0x24b   :  { %1553 = vmatmul.bf16.gmra.mxu0 %v2860_v23  ;;  %1572 = vmatmul.bf16.gmra.mxu1 %v2862_v24 }
 0x24c   :  { %1591 = vmatmul.bf16.gmra.mxu2 %v2864_v14  ;;  %1610 = vmatmul.bf16.gmra.mxu3 %v2866_v26 }
 0x258   :  { %v1321_v4 = vpop.f32.mrf.mxu0  ;;  %v1340_v11 = vpop.f32.mrf.mxu1 }
 0x259   :  { %v1322_v36 = vadd.f32 %v1321_v4, %v664_v3 }
 0x25b   :  { %v1341_v12 = vadd.f32 %v1340_v11, %v1322_v36 }
 0x25f   :  { %v1359_v34 = vpop.f32.mrf.mxu2  ;;  %v1378_v15 = vpop.f32.mrf.mxu3 }
 0x260   :  { %v1360_v35 = vadd.f32 %v1359_v34, %v1341_v12  ;;  %v1323_v13 = vpop.f32.mrf.mxu0  ;;  %v1342_v5 = vpop.f32.mrf.mxu1 }
 0x261   :  { %v1324_v42 = vadd.f32 %v1323_v13, %v664_v3 }
 0x262   :  { %v1379_v23 = vadd.f32 %v1378_v15, %v1360_v35 }
 0x263   :  { %v1343_v24 = vadd.f32 %v1342_v5, %v1324_v42 }
 0x264   :  { %1616 = vst [vmem:[#allocation11] sm:$0xff] %v1379_v23 }
 0x267   :  { %v1361_v14 = vpop.f32.mrf.mxu2  ;;  %v1380_v8 = vpop.f32.mrf.mxu3 }
 0x268   :  { %v1362_v26 = vadd.f32 %v1361_v14, %v1343_v24  ;;  %v1326_v44 = vpop.f32.mrf.mxu0  ;;  %v1345_v45 = vpop.f32.mrf.mxu1 }
 0x269   :  { %v1327_v48 = vadd.f32 %v1326_v44, %v664_v3 }
 0x26a   :  { %v1381_v47 = vadd.f32 %v1380_v8, %v1362_v26 }
 0x26b   :  { %v1346_v16 = vadd.f32 %v1345_v45, %v1327_v48 }
 0x26c   :  { %1620 = vst [vmem:[#allocation11 + $0x20] sm:$0xff] %v1381_v47 }
 0x26f   :  { %v1364_v17 = vpop.f32.mrf.mxu2  ;;  %v1383_v18 = vpop.f32.mrf.mxu3 }
 0x270   :  { %v1365_v19 = vadd.f32 %v1364_v17, %v1346_v16  ;;  %v1328_v20 = vpop.f32.mrf.mxu0  ;;  %v1347_v21 = vpop.f32.mrf.mxu1 }
 0x271   :  { %v1329_v58 = vadd.f32 %v1328_v20, %v664_v3 }
 0x272   :  { %v1384_v57 = vadd.f32 %v1383_v18, %v1365_v19 }
 0x273   :  { %v1348_v60 = vadd.f32 %v1347_v21, %v1329_v58 }
 0x274   :  { %1624 = vst [vmem:[#allocation11 + $0x40] sm:$0xff] %v1384_v57 }
 0x277   :  { %v1366_v22 = vpop.f32.mrf.mxu2  ;;  %v1385_v6 = vpop.f32.mrf.mxu3 }
 0x278   :  { %v1367_v7 = vadd.f32 %v1366_v22, %v1348_v60  ;;  %v1397_v27 = vpop.f32.mrf.mxu0  ;;  %v1416_v9 = vpop.f32.mrf.mxu1 }
 0x279   :  { %v1398_v1 = vadd.f32 %v1397_v27, %v665_v61 }
 0x27a   :  { %v1386_v10 = vadd.f32 %v1385_v6, %v1367_v7  ;;  %v667_v7 = vperm.slane %v2896_v2, 3 }
 0x27b   :  { %v1417_v28 = vadd.f32 %v1416_v9, %v1398_v1 }
 0x27c   :  { %1628 = vst [vmem:[#allocation11 + $0x60] sm:$0xff] %v1386_v10 }
 0x27f   :  { %v1435_v30 = vpop.f32.mrf.mxu2  ;;  %v1454_v31 = vpop.f32.mrf.mxu3 }
 0x280   :  { %v1436_v29 = vadd.f32 %v1435_v30, %v1417_v28  ;;  %v1399_v38 = vpop.f32.mrf.mxu0  ;;  %v1418_v39 = vpop.f32.mrf.mxu1 }
 0x281   :  { %v1400_v41 = vadd.f32 %v1399_v38, %v665_v61 }
 0x282   :  { %v1455_v40 = vadd.f32 %v1454_v31, %v1436_v29 }
 0x283   :  { %v1419_v46 = vadd.f32 %v1418_v39, %v1400_v41 }
 0x284   :  { %1617 = vst [vmem:[#allocation11 + $0x8] sm:$0xff] %v1455_v40 }
 0x287   :  { %v1437_v49 = vpop.f32.mrf.mxu2  ;;  %v1456_v50 = vpop.f32.mrf.mxu3 }
 0x288   :  { %v1438_v51 = vadd.f32 %v1437_v49, %v1419_v46  ;;  %v1402_v52 = vpop.f32.mrf.mxu0  ;;  %v1421_v53 = vpop.f32.mrf.mxu1 }
 0x289   :  { %v1403_v54 = vadd.f32 %v1402_v52, %v665_v61 }
 0x28a   :  { %v1457_v32 = vadd.f32 %v1456_v50, %v1438_v51 }
 0x28b   :  { %v1422_v43 = vadd.f32 %v1421_v53, %v1403_v54 }
 0x28c   :  { %1621 = vst [vmem:[#allocation11 + $0x28] sm:$0xff] %v1457_v32 }
 0x28f   :  { %v1440_v55 = vpop.f32.mrf.mxu2  ;;  %v1459_v56 = vpop.f32.mrf.mxu3 }
 0x290   :  { %v1441_v59 = vadd.f32 %v1440_v55, %v1422_v43  ;;  %v1404_v33 = vpop.f32.mrf.mxu0  ;;  %v1423_v62 = vpop.f32.mrf.mxu1 }
 0x291   :  { %v1405_v0 = vadd.f32 %v1404_v33, %v665_v61 }
 0x292   :  { %v1460_v63 = vadd.f32 %v1459_v56, %v1441_v59 }
 0x293   :  { %v1424_v25 = vadd.f32 %v1423_v62, %v1405_v0 }
 0x294   :  { %1625 = vst [vmem:[#allocation11 + $0x48] sm:$0xff] %v1460_v63 }
 0x297   :  { %v1442_v3 = vpop.f32.mrf.mxu2  ;;  %v1461_v4 = vpop.f32.mrf.mxu3 }
 0x298   :  { %v1443_v11 = vadd.f32 %v1442_v3, %v1424_v25  ;;  %v1473_v36 = vpop.f32.mrf.mxu0  ;;  %v1492_v12 = vpop.f32.mrf.mxu1 }
 0x299   :  { %v1474_v15 = vadd.f32 %v1473_v36, %v666_v37 }
 0x29a   :  { %v1462_v34 = vadd.f32 %v1461_v4, %v1443_v11 }
 0x29b   :  { %v1493_v35 = vadd.f32 %v1492_v12, %v1474_v15 }
 0x29c   :  { %1629 = vst [vmem:[#allocation11 + $0x68] sm:$0xff] %v1462_v34 }
 0x29f   :  { %v1511_v13 = vpop.f32.mrf.mxu2  ;;  %v1530_v5 = vpop.f32.mrf.mxu3 }
 0x2a0   :  { %v1512_v23 = vadd.f32 %v1511_v13, %v1493_v35  ;;  %v1475_v42 = vpop.f32.mrf.mxu0  ;;  %v1494_v24 = vpop.f32.mrf.mxu1 }
 0x2a1   :  { %v1476_v8 = vadd.f32 %v1475_v42, %v666_v37 }
 0x2a2   :  { %v1531_v14 = vadd.f32 %v1530_v5, %v1512_v23 }
 0x2a3   :  { %v1495_v26 = vadd.f32 %v1494_v24, %v1476_v8 }
 0x2a4   :  { %1618 = vst [vmem:[#allocation11 + $0x10] sm:$0xff] %v1531_v14 }
 0x2a7   :  { %v1513_v44 = vpop.f32.mrf.mxu2  ;;  %v1532_v45 = vpop.f32.mrf.mxu3 }
 0x2a8   :  { %v1514_v47 = vadd.f32 %v1513_v44, %v1495_v26  ;;  %v1478_v48 = vpop.f32.mrf.mxu0  ;;  %v1497_v16 = vpop.f32.mrf.mxu1 }
 0x2a9   :  { %v1479_v18 = vadd.f32 %v1478_v48, %v666_v37 }
 0x2aa   :  { %v1533_v17 = vadd.f32 %v1532_v45, %v1514_v47 }
 0x2ab   :  { %v1498_v19 = vadd.f32 %v1497_v16, %v1479_v18 }
 0x2ac   :  { %1622 = vst [vmem:[#allocation11 + $0x30] sm:$0xff] %v1533_v17 }
 0x2af   :  { %v1516_v20 = vpop.f32.mrf.mxu2  ;;  %v1535_v21 = vpop.f32.mrf.mxu3 }
 0x2b0   :  { %v1517_v57 = vadd.f32 %v1516_v20, %v1498_v19  ;;  %v1480_v58 = vpop.f32.mrf.mxu0  ;;  %v1499_v60 = vpop.f32.mrf.mxu1 }
 0x2b1   :  { %v1481_v22 = vadd.f32 %v1480_v58, %v666_v37 }
 0x2b2   :  { %v1536_v61 = vadd.f32 %v1535_v21, %v1517_v57 }
 0x2b3   :  { %v1500_v6 = vadd.f32 %v1499_v60, %v1481_v22 }
 0x2b4   :  { %1626 = vst [vmem:[#allocation11 + $0x50] sm:$0xff] %v1536_v61 }
 0x2b7   :  { %v1518_v27 = vpop.f32.mrf.mxu2  ;;  %v1537_v9 = vpop.f32.mrf.mxu3 }
 0x2b8   :  { %v1519_v10 = vadd.f32 %v1518_v27, %v1500_v6  ;;  %v1549_v1 = vpop.f32.mrf.mxu0  ;;  %v1568_v28 = vpop.f32.mrf.mxu1 }
 0x2b9   :  { %v1550_v31 = vadd.f32 %v1549_v1, %v667_v7 }
 0x2ba   :  { %v1538_v30 = vadd.f32 %v1537_v9, %v1519_v10 }
 0x2bb   :  { %v1569_v29 = vadd.f32 %v1568_v28, %v1550_v31 }
 0x2bc   :  { %1630 = vst [vmem:[#allocation11 + $0x70] sm:$0xff] %v1538_v30 }
 0x2bf   :  { %v1587_v38 = vpop.f32.mrf.mxu2  ;;  %v1606_v39 = vpop.f32.mrf.mxu3 }
 0x2c0   :  { %v1588_v40 = vadd.f32 %v1587_v38, %v1569_v29  ;;  %v1551_v41 = vpop.f32.mrf.mxu0  ;;  %v1570_v46 = vpop.f32.mrf.mxu1 }
 0x2c1   :  { %v1552_v50 = vadd.f32 %v1551_v41, %v667_v7 }
 0x2c2   :  { %v1607_v49 = vadd.f32 %v1606_v39, %v1588_v40 }
 0x2c3   :  { %v1571_v51 = vadd.f32 %v1570_v46, %v1552_v50 }
 0x2c4   :  { %1619 = vst [vmem:[#allocation11 + $0x18] sm:$0xff] %v1607_v49 }
 0x2c7   :  { %v1589_v52 = vpop.f32.mrf.mxu2  ;;  %v1608_v2 = vpop.f32.mrf.mxu3 }
 0x2c8   :  { %v1590_v53 = vadd.f32 %v1589_v52, %v1571_v51  ;;  %v1554_v32 = vpop.f32.mrf.mxu0  ;;  %v1573_v55 = vpop.f32.mrf.mxu1 }
 0x2c9   :  { %v1555_v43 = vadd.f32 %v1554_v32, %v667_v7 }
 0x2ca   :  { %v1609_v54 = vadd.f32 %v1608_v2, %v1590_v53 }
 0x2cb   :  { %v1574_v56 = vadd.f32 %v1573_v55, %v1555_v43 }
 0x2cc   :  { %1623 = vst [vmem:[#allocation11 + $0x38] sm:$0xff] %v1609_v54 }
 0x2cf   :  { %v1592_v59 = vpop.f32.mrf.mxu2  ;;  %v1611_v33 = vpop.f32.mrf.mxu3 }
 0x2d0   :  { %v1593_v62 = vadd.f32 %v1592_v59, %v1574_v56  ;;  %v1556_v63 = vpop.f32.mrf.mxu0  ;;  %v1575_v37 = vpop.f32.mrf.mxu1 }
 0x2d1   :  { %v1557_v25 = vadd.f32 %v1556_v63, %v667_v7 }
 0x2d2   :  { %v1612_v0 = vadd.f32 %v1611_v33, %v1593_v62 }
 0x2d3   :  { %v1576_v3 = vadd.f32 %v1575_v37, %v1557_v25 }
 0x2d4   :  { %1627 = vst [vmem:[#allocation11 + $0x58] sm:$0xff] %v1612_v0 }
 0x2d7   :  { %v1594_v4 = vpop.f32.mrf.mxu2  ;;  %v1613_v36 = vpop.f32.mrf.mxu3 }
 0x2d8   :  { %v1595_v11 = vadd.f32 %v1594_v4, %v1576_v3 }
 0x2da   :  { %v1614_v12 = vadd.f32 %v1613_v36, %v1595_v11 }
 0x2dc   :  { %1631 = vst [vmem:[#allocation11 + $0x78] sm:$0xff] %v1614_v12 }
 0x2dd   :  { %1644 = dma.vmem_to_hbm [thread:$0]  %s1637_s4, 2048, %s1639_s21, [#allocation4], %s2639_s22, %s2639_s22, %s2640_s23  }
 0x2de   :  { %2626 = dma.done.wait [#allocation4], 2048  }
 0x2df   :  { %2627 = vsyncadd [#allocation4], 4294965248 }
 0x2e0   :  { %1649 = vsyncpa [#allocation3], 1 }
 0x2e1   :  { %1650 = vsyncpa [#allocation6], 1 }
 0x2e2   :  { %1651 = vsyncpa [#allocation9], 1 }
 0x2e3   :  { %1652 = vsyncpa [#allocation4], 1 }

</bundles_post_ra>
